<compile_context>
chip_gen: v5e
topology: v5e:2x2
jax: 0.10.0
libtpu: 0.0.40
codegen_flags: <defaults>
</compile_context>

<pallas_src>
import functools

import jax
import jax.numpy as jnp
from jax.experimental import pallas as pl
from jax.experimental.pallas import tpu as pltpu

MARGIN = 0.3


def _round_up(x, m):
    return ((x + m - 1) // m) * m


def _triplet_kernel(sq_row_ref, sq_col_ref, t_row_ref, t_col_ref,
                    x_row_ref, xt_col_ref, o_ref,
                    acc_ap_ref, acc_an_ref, *, n_valid, block_n, margin):
    j = pl.program_id(1)

    # Reset the running hard-positive / hard-negative accumulators at the start
    # of each row tile's column sweep.
    @pl.when(j == 0)
    def _():
        acc_ap_ref[...] = jnp.full(acc_ap_ref.shape, -jnp.inf, jnp.float32)
        acc_an_ref[...] = jnp.full(acc_an_ref.shape, jnp.inf, jnp.float32)

    # Squared pairwise Euclidean distances for this (bm, bn) tile (MXU matmul).
    gram = jnp.dot(x_row_ref[...], xt_col_ref[...],
                   preferred_element_type=jnp.float32)            # (bm, bn)
    d2 = sq_row_ref[...] + sq_col_ref[...] - 2.0 * gram
    d2 = jnp.maximum(d2, 1e-12)          # matches torch clamp(min=1e-12)

    same = t_row_ref[...] == t_col_ref[...]                        # (bm, bn)
    col = jax.lax.broadcasted_iota(jnp.int32, (1, block_n), 1) + j * block_n
    valid = col < n_valid                                          # mask padded cols

    ap = jnp.max(jnp.where(same & valid, d2, -jnp.inf), axis=1, keepdims=True)
    an = jnp.min(jnp.where(same | (~valid), jnp.inf, d2), axis=1, keepdims=True)
    acc_ap_ref[...] = jnp.maximum(acc_ap_ref[...], ap)
    acc_an_ref[...] = jnp.minimum(acc_an_ref[...], an)

    # Finalize: sqrt only the per-row winners, then MarginRankingLoss hinge
    # (y = 1):  max(0, dist_ap - dist_an + margin).
    @pl.when(j == pl.num_programs(1) - 1)
    def _():
        dist_ap = jnp.sqrt(acc_ap_ref[...])
        dist_an = jnp.sqrt(acc_an_ref[...])
        o_ref[...] = jnp.maximum(dist_ap - dist_an + margin, 0.0)


def triplet_loss(inputs, targets, margin=MARGIN, block=256):
    """inputs: (n, d) float, targets: (n,) int -> scalar float32 loss."""
    n, d = inputs.shape
    tile = min(block, _round_up(n, 128))          # tile multiple of 128
    n_pad = _round_up(n, tile)
    d_pad = _round_up(d, 128)                     # lane-dense / MXU-deep K

    x = jnp.pad(inputs.astype(jnp.float32), ((0, n_pad - n), (0, d_pad - d)))
    xt = x.T                                      # transpose outside the kernel
    sq = jnp.sum(x * x, axis=1, keepdims=True)    # (n_pad, 1) row norms
    t = jnp.pad(targets.astype(jnp.int32), (0, n_pad - n), constant_values=-1)

    kernel = functools.partial(_triplet_kernel, n_valid=n, block_n=tile,
                               margin=float(margin))
    per_row = pl.pallas_call(
        kernel,
        out_shape=jax.ShapeDtypeStruct((n_pad, 1), jnp.float32),
        grid_spec=pltpu.PrefetchScalarGridSpec(
            num_scalar_prefetch=0,
            grid=(n_pad // tile, n_pad // tile),
            in_specs=[
                pl.BlockSpec((tile, 1), lambda i, j: (i, 0)),       # row norms
                pl.BlockSpec((1, tile), lambda i, j: (0, j)),       # col norms
                pl.BlockSpec((tile, 1), lambda i, j: (i, 0)),       # row labels
                pl.BlockSpec((1, tile), lambda i, j: (0, j)),       # col labels
                pl.BlockSpec((tile, d_pad), lambda i, j: (i, 0)),   # x rows
                pl.BlockSpec((d_pad, tile), lambda i, j: (0, j)),   # x^T cols
            ],
            out_specs=pl.BlockSpec((tile, 1), lambda i, j: (i, 0)),
            scratch_shapes=[pltpu.VMEM((tile, 1), jnp.float32),     # running max ap^2
                            pltpu.VMEM((tile, 1), jnp.float32)],    # running min an^2
        ),
        compiler_params=pltpu.CompilerParams(
            dimension_semantics=("parallel", "arbitrary")),
    )(sq, sq.reshape(1, n_pad), t.reshape(n_pad, 1), t.reshape(1, n_pad), x, xt)

    return jnp.mean(per_row[:n, 0])


def _triplet_loss_ref(inputs, targets, margin=MARGIN):
    # Pure-JAX reference mirroring the PyTorch module.
    sq = jnp.sum(inputs ** 2, axis=1, keepdims=True)
    dist = sq + sq.T - 2.0 * (inputs @ inputs.T)
    dist = jnp.sqrt(jnp.clip(dist, 1e-12, None))
    mask = targets[:, None] == targets[None, :]
    dist_ap = jnp.max(jnp.where(mask, dist, -jnp.inf), axis=1)
    dist_an = jnp.min(jnp.where(mask, jnp.inf, dist), axis=1)
    return jnp.mean(jnp.maximum(dist_ap - dist_an + margin, 0.0))


if __name__ == "__main__":
    key = jax.random.PRNGKey(0)
    n, d = 8, 32                                   # batch of 8 samples, 32-dim features
    inputs = jax.random.normal(key, (n, d), dtype=jnp.float32)
    # 4 classes, 2 samples each (every sample has at least one positive and one negative)
    targets = jnp.array([0, 0, 1, 1, 2, 2, 3, 3], dtype=jnp.int32)

    loss = jax.block_until_ready(triplet_loss(inputs, targets))
    ref = jax.block_until_ready(_triplet_loss_ref(inputs, targets))
    assert jnp.allclose(loss, ref, atol=1e-5, rtol=1e-5), (loss, ref)
    print("KERNEL_OK")
</pallas_src>

<mosaic_0001>
module attributes {stable_mosaic.version = 11 : i64} {
  func.func @_triplet_kernel(%arg0: i32, %arg1: i32, %arg2: memref<128x1xf32, #tpu.memory_space<vmem>>, %arg3: memref<1x128xf32, #tpu.memory_space<vmem>>, %arg4: memref<128x1xi32, #tpu.memory_space<vmem>>, %arg5: memref<1x128xi32, #tpu.memory_space<vmem>>, %arg6: memref<128x128xf32, #tpu.memory_space<vmem>>, %arg7: memref<128x128xf32, #tpu.memory_space<vmem>>, %arg8: memref<128x1xf32, #tpu.memory_space<vmem>>, %arg9: memref<128x1xf32, #tpu.memory_space<vmem>>, %arg10: memref<128x1xf32, #tpu.memory_space<vmem>>) attributes {dimension_semantics = [#tpu.dimension_semantics<parallel>, #tpu.dimension_semantics<arbitrary>], iteration_bounds = array<i64: 1, 1>, scalar_prefetch = 0 : i64, scratch_operands = 2 : i64, tpu.core_type = #tpu.core_type<tc>, window_params = [{transform_indices = @transform_0, window_bounds = array<i64: 128, 1>}, {transform_indices = @transform_1, window_bounds = array<i64: 1, 128>}, {transform_indices = @transform_2, window_bounds = array<i64: 128, 1>}, {transform_indices = @transform_3, window_bounds = array<i64: 1, 128>}, {transform_indices = @transform_4, window_bounds = array<i64: 128, 128>}, {transform_indices = @transform_5, window_bounds = array<i64: 128, 128>}, {transform_indices = @transform_6, window_bounds = array<i64: 128, 1>}]} {
    %c0_i32 = arith.constant 0 : i32
    %0 = arith.cmpi eq, %arg1, %c0_i32 : i32
    %1 = arith.extui %0 : i1 to i32
    %c0_i32_0 = arith.constant 0 : i32
    %2 = arith.cmpi ne, %1, %c0_i32_0 : i32
    scf.if %2 {
      %cst_29 = arith.constant 0xFF800000 : f32
      %49 = vector.broadcast %cst_29 : f32 to vector<128x1xf32>
      %c0_30 = arith.constant 0 : index
      %c0_31 = arith.constant 0 : index
      %50 = vector.load %arg9[%c0_30, %c0_31] : memref<128x1xf32, #tpu.memory_space<vmem>>, vector<128x1xf32>
      tpu.vector_store %arg9[%c0_30, %c0_31], %49 {strides = array<i32>} : memref<128x1xf32, #tpu.memory_space<vmem>>, vector<128x1xf32>,
      %cst_32 = arith.constant 0x7F800000 : f32
      %51 = vector.broadcast %cst_32 : f32 to vector<128x1xf32>
      %c0_33 = arith.constant 0 : index
      %c0_34 = arith.constant 0 : index
      %52 = vector.load %arg10[%c0_33, %c0_34] : memref<128x1xf32, #tpu.memory_space<vmem>>, vector<128x1xf32>
      tpu.vector_store %arg10[%c0_33, %c0_34], %51 {strides = array<i32>} : memref<128x1xf32, #tpu.memory_space<vmem>>, vector<128x1xf32>,
    } else {
    }
    %c0 = arith.constant 0 : index
    %c0_1 = arith.constant 0 : index
    %3 = vector.load %arg6[%c0, %c0_1] : memref<128x128xf32, #tpu.memory_space<vmem>>, vector<128x128xf32>
    %c0_2 = arith.constant 0 : index
    %c0_3 = arith.constant 0 : index
    %4 = vector.load %arg7[%c0_2, %c0_3] : memref<128x128xf32, #tpu.memory_space<vmem>>, vector<128x128xf32>
    %cst = arith.constant dense<0.000000e+00> : vector<128x128xf32>
    %5 = tpu.matmul %3, %4, %cst {dimension_numbers = #tpu.dot_dimension_numbers<[1], [0], [0], [1], [0, 0, 1, 1], [], []>} : vector<128x128xf32>, vector<128x128xf32>, vector<128x128xf32> -> vector<128x128xf32>
    %c0_4 = arith.constant 0 : index
    %c0_5 = arith.constant 0 : index
    %6 = vector.load %arg2[%c0_4, %c0_5] : memref<128x1xf32, #tpu.memory_space<vmem>>, vector<128x1xf32>
    %c0_6 = arith.constant 0 : index
    %c0_7 = arith.constant 0 : index
    %7 = vector.load %arg3[%c0_6, %c0_7] : memref<1x128xf32, #tpu.memory_space<vmem>>, vector<1x128xf32>
    %8 = vector.broadcast %6 : vector<128x1xf32> to vector<128x128xf32>
    %9 = vector.broadcast %7 : vector<1x128xf32> to vector<128x128xf32>
    %10 = arith.addf %8, %9 : vector<128x128xf32>
    %cst_8 = arith.constant 2.000000e+00 : f32
    %11 = vector.broadcast %cst_8 : f32 to vector<128x128xf32>
    %12 = arith.mulf %11, %5 : vector<128x128xf32>
    %13 = arith.subf %10, %12 : vector<128x128xf32>
    %cst_9 = arith.constant 9.99999996E-13 : f32
    %14 = vector.broadcast %cst_9 : f32 to vector<128x128xf32>
    %15 = arith.maximumf %13, %14 : vector<128x128xf32>
    %c0_10 = arith.constant 0 : index
    %c0_11 = arith.constant 0 : index
    %16 = vector.load %arg4[%c0_10, %c0_11] : memref<128x1xi32, #tpu.memory_space<vmem>>, vector<128x1xi32>
    %c0_12 = arith.constant 0 : index
    %c0_13 = arith.constant 0 : index
    %17 = vector.load %arg5[%c0_12, %c0_13] : memref<1x128xi32, #tpu.memory_space<vmem>>, vector<1x128xi32>
    %18 = vector.broadcast %16 : vector<128x1xi32> to vector<128x128xi32>
    %19 = vector.broadcast %17 : vector<1x128xi32> to vector<128x128xi32>
    %20 = arith.cmpi eq, %18, %19 : vector<128x128xi32>
    %21 = tpu.iota {dimensions = array<i32: 1>} : vector<1x128xi32>
    %c128_i32 = arith.constant 128 : i32
    %22 = arith.muli %arg1, %c128_i32 : i32
    %23 = vector.broadcast %22 : i32 to vector<1x128xi32>
    %24 = arith.addi %21, %23 : vector<1x128xi32>
    %c8_i32 = arith.constant 8 : i32
    %25 = vector.broadcast %c8_i32 : i32 to vector<1x128xi32>
    %26 = arith.cmpi slt, %24, %25 : vector<1x128xi32>
    %27 = vector.broadcast %26 : vector<1x128xi1> to vector<128x128xi1>
    %28 = arith.andi %20, %27 : vector<128x128xi1>
    %cst_14 = arith.constant 0xFF800000 : f32
    %29 = vector.broadcast %cst_14 : f32 to vector<128x128xf32>
    %30 = arith.select %28, %15, %29 : vector<128x128xi1>, vector<128x128xf32>
    %cst_15 = arith.constant dense<0xFF800000> : vector<128xf32>
    %31 = vector.multi_reduction <maximumf>, %30, %cst_15 [1] : vector<128x128xf32> to vector<128xf32>
    %32 = vector.shape_cast %31 : vector<128xf32> to vector<128x1xf32>
    %cst_16 = arith.constant dense<true> : vector<1x128xi1>
    %33 = arith.xori %26, %cst_16 : vector<1x128xi1>
    %34 = vector.broadcast %33 : vector<1x128xi1> to vector<128x128xi1>
    %35 = arith.ori %20, %34 : vector<128x128xi1>
    %cst_17 = arith.constant 0x7F800000 : f32
    %36 = vector.broadcast %cst_17 : f32 to vector<128x128xf32>
    %37 = arith.select %35, %36, %15 : vector<128x128xi1>, vector<128x128xf32>
    %cst_18 = arith.constant dense<0x7F800000> : vector<128xf32>
    %38 = vector.multi_reduction <minimumf>, %37, %cst_18 [1] : vector<128x128xf32> to vector<128xf32>
    %39 = vector.shape_cast %38 : vector<128xf32> to vector<128x1xf32>
    %c0_19 = arith.constant 0 : index
    %c0_20 = arith.constant 0 : index
    %40 = vector.load %arg9[%c0_19, %c0_20] : memref<128x1xf32, #tpu.memory_space<vmem>>, vector<128x1xf32>
    %41 = arith.maximumf %40, %32 : vector<128x1xf32>
    %c0_21 = arith.constant 0 : index
    %c0_22 = arith.constant 0 : index
    %42 = vector.load %arg9[%c0_21, %c0_22] : memref<128x1xf32, #tpu.memory_space<vmem>>, vector<128x1xf32>
    tpu.vector_store %arg9[%c0_21, %c0_22], %41 {strides = array<i32>} : memref<128x1xf32, #tpu.memory_space<vmem>>, vector<128x1xf32>,
    %c0_23 = arith.constant 0 : index
    %c0_24 = arith.constant 0 : index
    %43 = vector.load %arg10[%c0_23, %c0_24] : memref<128x1xf32, #tpu.memory_space<vmem>>, vector<128x1xf32>
    %44 = arith.minimumf %43, %39 : vector<128x1xf32>
    %c0_25 = arith.constant 0 : index
    %c0_26 = arith.constant 0 : index
    %45 = vector.load %arg10[%c0_25, %c0_26] : memref<128x1xf32, #tpu.memory_space<vmem>>, vector<128x1xf32>
    tpu.vector_store %arg10[%c0_25, %c0_26], %44 {strides = array<i32>} : memref<128x1xf32, #tpu.memory_space<vmem>>, vector<128x1xf32>,
    %c0_i32_27 = arith.constant 0 : i32
    %46 = arith.cmpi eq, %arg1, %c0_i32_27 : i32
    %47 = arith.extui %46 : i1 to i32
    %c0_i32_28 = arith.constant 0 : i32
    %48 = arith.cmpi ne, %47, %c0_i32_28 : i32
    scf.if %48 {
      %c0_29 = arith.constant 0 : index
      %c0_30 = arith.constant 0 : index
      %49 = vector.load %arg9[%c0_29, %c0_30] : memref<128x1xf32, #tpu.memory_space<vmem>>, vector<128x1xf32>
      %50 = math.sqrt %49 : vector<128x1xf32>
      %c0_31 = arith.constant 0 : index
      %c0_32 = arith.constant 0 : index
      %51 = vector.load %arg10[%c0_31, %c0_32] : memref<128x1xf32, #tpu.memory_space<vmem>>, vector<128x1xf32>
      %52 = math.sqrt %51 : vector<128x1xf32>
      %53 = arith.subf %50, %52 : vector<128x1xf32>
      %cst_33 = arith.constant 3.000000e-01 : f32
      %54 = vector.broadcast %cst_33 : f32 to vector<128x1xf32>
      %55 = arith.addf %53, %54 : vector<128x1xf32>
      %cst_34 = arith.constant 0.000000e+00 : f32
      %56 = vector.broadcast %cst_34 : f32 to vector<128x1xf32>
      %57 = arith.maximumf %55, %56 : vector<128x1xf32>
      %c0_35 = arith.constant 0 : index
      %c0_36 = arith.constant 0 : index
      %58 = vector.load %arg8[%c0_35, %c0_36] : memref<128x1xf32, #tpu.memory_space<vmem>>, vector<128x1xf32>
      tpu.vector_store %arg8[%c0_35, %c0_36], %57 {strides = array<i32>} : memref<128x1xf32, #tpu.memory_space<vmem>>, vector<128x1xf32>,
    } else {
    }
    return
  }
  func.func @transform_0(%arg0: i32, %arg1: i32) -> (i32, i32) {
    %c0_i32 = arith.constant 0 : i32
    %c0_i32_0 = arith.constant 0 : i32
    return %arg0, %c0_i32 : i32, i32
  }
  func.func @transform_1(%arg0: i32, %arg1: i32) -> (i32, i32) {
    %c0_i32 = arith.constant 0 : i32
    %c0_i32_0 = arith.constant 0 : i32
    return %c0_i32, %arg1 : i32, i32
  }
  func.func @transform_2(%arg0: i32, %arg1: i32) -> (i32, i32) {
    %c0_i32 = arith.constant 0 : i32
    %c0_i32_0 = arith.constant 0 : i32
    return %arg0, %c0_i32 : i32, i32
  }
  func.func @transform_3(%arg0: i32, %arg1: i32) -> (i32, i32) {
    %c0_i32 = arith.constant 0 : i32
    %c0_i32_0 = arith.constant 0 : i32
    return %c0_i32, %arg1 : i32, i32
  }
  func.func @transform_4(%arg0: i32, %arg1: i32) -> (i32, i32) {
    %c0_i32 = arith.constant 0 : i32
    %c0_i32_0 = arith.constant 0 : i32
    return %arg0, %c0_i32 : i32, i32
  }
  func.func @transform_5(%arg0: i32, %arg1: i32) -> (i32, i32) {
    %c0_i32 = arith.constant 0 : i32
    %c0_i32_0 = arith.constant 0 : i32
    return %c0_i32, %arg1 : i32, i32
  }
  func.func @transform_6(%arg0: i32, %arg1: i32) -> (i32, i32) {
    %c0_i32 = arith.constant 0 : i32
    %c0_i32_0 = arith.constant 0 : i32
    return %arg0, %c0_i32 : i32, i32
  }
}

</mosaic_0001>

<bundles_post_ra>
// kernel: tpu_custom_call.1
= control target key start
LH: loop header
LB: loop body
LE: loop exit
PB: predicated region body
PF: predicated region fallthrough
CT: control target
= control target key end

     0   :  { %v1247_v0 = vmov 0   ;;  %vm1248_vm3 = vmmov 1   ;;  %s2374_s5 = inlined_call_operand.vmem [shape: f32[128,128], index: 5, kind: input, shape index: {}]   ;;  %s2375_s0 = inlined_call_operand.vmem [shape: f32[128,1], index: 0, kind: input, shape index: {}]   ;;  %s2376_s1 = inlined_call_operand.vmem [shape: f32[1,128], index: 1, kind: input, shape index: {}]   ;;  %s2377_s3 = inlined_call_operand.vmem [shape: s32[1,128], index: 3, kind: input, shape index: {}]   ;;  %s2378_s4 = inlined_call_operand.vmem [shape: f32[128,128], index: 4, kind: input, shape index: {}]   ;;  %s2379_s2 = inlined_call_operand.vmem [shape: s32[128,1], index: 2, kind: input, shape index: {}]   ;;  %s2380_s6 = inlined_call_operand.vmem [shape: f32[128,1], index: 6, kind: output, shape index: {}]  }
   0x1   :  { %1180 = vset.pattern.permute.xlu2 %v1247_v0  ;;  %1179 = vset.pattern.permute.xlu1 %v1247_v0  ;;  %v91_v1 = vld [vmem:[%s2374_s5 + $0x78] sm:$0xff]  ;;  %v161_v2 = vld [vmem:[%s2375_s0 + $0x20] sm:$0xff]  ;;  %v159_v3 = vld [vmem:[%s2375_s0 + $0x10] sm:$0xff] }
   0x2   :  { %1178 = vset.pattern.permute.xlu0 %v1247_v0  ;;  %92 = vmatpush.msra.mxu0 %v91_v1  ;;  %v157_v4 = vld [vmem:[%s2375_s0] sm:$0xff]  ;;  %v90_v5 = vld [vmem:[%s2374_s5 + $0x70] sm:$0xff]  ;;  %v89_v6 = vld [vmem:[%s2374_s5 + $0x68] sm:$0xff] }
   0x3   :  { %1126 = vmatpush.msra.mxu1 %v91_v1  ;;  %1127 = vmatpush.msra.mxu2 %v91_v1  ;;  %v88_v7 = vld [vmem:[%s2374_s5 + $0x60] sm:$0xff]  ;;  %v87_v8 = vld [vmem:[%s2374_s5 + $0x58] sm:$0xff]  ;;  %v162_v9 = vld [vmem:[%s2375_s0 + $0x28] sm:$0xff] }
   0x4   :  { %1128 = vmatpush.msra.mxu3 %v91_v1  ;;  %196 = vperm.xlu2 %1180, %v161_v2   ;;  %v160_v10 = vld [vmem:[%s2375_s0 + $0x18] sm:$0xff]  ;;  %v158_v11 = vld [vmem:[%s2375_s0 + $0x8] sm:$0xff]  ;;  %v86_v12 = vld [vmem:[%s2374_s5 + $0x50] sm:$0xff] }
   0x5   :  { %186 = vperm.xlu1 %1179, %v159_v3   ;;  %176 = vperm.xlu0 %1178, %v157_v4   ;;  %v85_v13 = vld [vmem:[%s2374_s5 + $0x48] sm:$0xff]  ;;  %v84_v14 = vld [vmem:[%s2374_s5 + $0x40] sm:$0xff]  ;;  %v83_v15 = vld [vmem:[%s2374_s5 + $0x38] sm:$0xff] }
   0x6   :  { %93 = vmatpush.msra.mxu0 %v90_v5  ;;  %1129 = vmatpush.msra.mxu1 %v90_v5  ;;  %v165_v16 = vld [vmem:[%s2375_s0 + $0x40] sm:$0xff]  ;;  %v164_v17 = vld [vmem:[%s2375_s0 + $0x38] sm:$0xff]  ;;  %v163_v18 = vld [vmem:[%s2375_s0 + $0x30] sm:$0xff] }
   0x7   :  { %1130 = vmatpush.msra.mxu2 %v90_v5  ;;  %1131 = vmatpush.msra.mxu3 %v90_v5  ;;  %v82_v19 = vld [vmem:[%s2374_s5 + $0x30] sm:$0xff]  ;;  %v81_v20 = vld [vmem:[%s2374_s5 + $0x28] sm:$0xff]  ;;  %v80_v21 = vld [vmem:[%s2374_s5 + $0x20] sm:$0xff] }
   0x8   :  { %94 = vmatpush.msra.mxu0 %v89_v6  ;;  %1132 = vmatpush.msra.mxu1 %v89_v6  ;;  %v79_v22 = vld [vmem:[%s2374_s5 + $0x18] sm:$0xff]  ;;  %v167_v24 = vld [vmem:[%s2375_s0 + $0x50] sm:$0xff]  ;;  %v166_v25 = vld [vmem:[%s2375_s0 + $0x48] sm:$0xff] }
   0x9   :  { %1133 = vmatpush.msra.mxu2 %v89_v6  ;;  %1134 = vmatpush.msra.mxu3 %v89_v6  ;;  %v168_v23 = vld [vmem:[%s2375_s0 + $0x58] sm:$0xff]  ;;  %v78_v26 = vld [vmem:[%s2374_s5 + $0x10] sm:$0xff]  ;;  %v77_v27 = vld [vmem:[%s2374_s5 + $0x8] sm:$0xff] }
   0xa   :  { %95 = vmatpush.msra.mxu0 %v88_v7  ;;  %1135 = vmatpush.msra.mxu1 %v88_v7  ;;  %v76_v28 = vld [vmem:[%s2374_s5] sm:$0xff]  ;;  %v171_v33 = vld [vmem:[%s2375_s0 + $0x70] sm:$0xff]  ;;  %v170_v34 = vld [vmem:[%s2375_s0 + $0x68] sm:$0xff] }
   0xb   :  { %1136 = vmatpush.msra.mxu2 %v88_v7  ;;  %1137 = vmatpush.msra.mxu3 %v88_v7  ;;  %v60_v29 = vld [vmem:[%s2378_s4] sm:$0xff]  ;;  %v61_v36 = vld [vmem:[%s2378_s4 + $0x8] sm:$0xff]  ;;  %v172_v42 = vld [vmem:[%s2375_s0 + $0x78] sm:$0xff] }
   0xc   :  { %96 = vmatpush.msra.mxu0 %v87_v8  ;;  %1138 = vmatpush.msra.mxu1 %v87_v8  ;;  %v64_v30 = vld [vmem:[%s2378_s4 + $0x20] sm:$0xff]  ;;  %v65_v37 = vld [vmem:[%s2378_s4 + $0x28] sm:$0xff]  ;;  %v62_v43 = vld [vmem:[%s2378_s4 + $0x10] sm:$0xff] }
   0xd   :  { %1139 = vmatpush.msra.mxu2 %v87_v8  ;;  %1140 = vmatpush.msra.mxu3 %v87_v8  ;;  %v68_v31 = vld [vmem:[%s2378_s4 + $0x40] sm:$0xff]  ;;  %v69_v38 = vld [vmem:[%s2378_s4 + $0x48] sm:$0xff]  ;;  %v66_v44 = vld [vmem:[%s2378_s4 + $0x30] sm:$0xff] }
   0xe   :  { %201 = vperm.xlu2 %1180, %v162_v9   ;;  %191 = vperm.xlu1 %1179, %v160_v10   ;;  %v72_v32 = vld [vmem:[%s2378_s4 + $0x60] sm:$0xff]  ;;  %v73_v39 = vld [vmem:[%s2378_s4 + $0x68] sm:$0xff]  ;;  %v70_v45 = vld [vmem:[%s2378_s4 + $0x50] sm:$0xff] }
   0xf   :  { %181 = vperm.xlu0 %1178, %v158_v11   ;;  %97 = vmatpush.msra.mxu0 %v86_v12  ;;  %v169_v35 = vld [vmem:[%s2375_s0 + $0x60] sm:$0xff]  ;;  %v322_v40 = vld [vmem:[%s2379_s2 + $0x8] sm:$0xff]  ;;  %v74_v46 = vld [vmem:[%s2378_s4 + $0x70] sm:$0xff] }
  0x10   :  { %1141 = vmatpush.msra.mxu1 %v86_v12  ;;  %1142 = vmatpush.msra.mxu2 %v86_v12  ;;  %v321_v41 = vld [vmem:[%s2379_s2] sm:$0xff]  ;;  %v324_v48 = vld [vmem:[%s2379_s2 + $0x18] sm:$0xff]  ;;  %v323_v49 = vld [vmem:[%s2379_s2 + $0x10] sm:$0xff] }
  0x11   :  { %1143 = vmatpush.msra.mxu3 %v86_v12  ;;  %98 = vmatpush.msra.mxu0 %v85_v13  ;;  %v325_v47 = vld [vmem:[%s2379_s2 + $0x20] sm:$0xff]  ;;  %v63_v50 = vld [vmem:[%s2378_s4 + $0x18] sm:$0xff]  ;;  %v327_v55 = vld [vmem:[%s2379_s2 + $0x30] sm:$0xff] }
  0x12   :  { %1144 = vmatpush.msra.mxu1 %v85_v13  ;;  %1145 = vmatpush.msra.mxu2 %v85_v13  ;;  %v67_v51 = vld [vmem:[%s2378_s4 + $0x38] sm:$0xff]  ;;  %v326_v56 = vld [vmem:[%s2379_s2 + $0x28] sm:$0xff]  ;;  %v331_v57 = vld [vmem:[%s2379_s2 + $0x50] sm:$0xff] }
  0x13   :  { %1146 = vmatpush.msra.mxu3 %v85_v13  ;;  %99 = vmatpush.msra.mxu0 %v84_v14  ;;  %v71_v52 = vld [vmem:[%s2378_s4 + $0x58] sm:$0xff]  ;;  %v330_v58 = vld [vmem:[%s2379_s2 + $0x48] sm:$0xff]  ;;  %v329_v59 = vld [vmem:[%s2379_s2 + $0x40] sm:$0xff] }
  0x14   :  { %1147 = vmatpush.msra.mxu1 %v84_v14  ;;  %1148 = vmatpush.msra.mxu2 %v84_v14  ;;  %v75_v53 = vld [vmem:[%s2378_s4 + $0x78] sm:$0xff]  ;;  %v334_v60 = vld [vmem:[%s2379_s2 + $0x68] sm:$0xff]  ;;  %v333_v61 = vld [vmem:[%s2379_s2 + $0x60] sm:$0xff] }
  0x15   :  { %1149 = vmatpush.msra.mxu3 %v84_v14  ;;  %100 = vmatpush.msra.mxu0 %v83_v15  ;;  %v328_v54 = vld [vmem:[%s2379_s2 + $0x38] sm:$0xff]  ;;  %v335_v0 = vld [vmem:[%s2379_s2 + $0x70] sm:$0xff] }
  0x16   :  { %1150 = vmatpush.msra.mxu1 %v83_v15  ;;  %1151 = vmatpush.msra.mxu2 %v83_v15  ;;  %v332_v62 = vld [vmem:[%s2379_s2 + $0x58] sm:$0xff] }
  0x17   :  { %1152 = vmatpush.msra.mxu3 %v83_v15  ;;  %216 = vperm.xlu2 %1180, %v165_v16   ;;  %v336_v63 = vld [vmem:[%s2379_s2 + $0x78] sm:$0xff] }
  0x18   :  { %211 = vperm.xlu1 %1179, %v164_v17   ;;  %206 = vperm.xlu0 %1178, %v163_v18   ;;  %v403_v17 = vlaneseq }
  0x19   :  { %101 = vmatpush.msra.mxu0 %v82_v19  ;;  %1153 = vmatpush.msra.mxu1 %v82_v19 }
  0x1a   :  { %1154 = vmatpush.msra.mxu2 %v82_v19  ;;  %1155 = vmatpush.msra.mxu3 %v82_v19  ;;  %v1500_v19 = vand.u32 127, %v403_v17 }
  0x1b   :  { %102 = vmatpush.msra.mxu0 %v81_v20  ;;  %1156 = vmatpush.msra.mxu1 %v81_v20 }
  0x1c   :  { %1157 = vmatpush.msra.mxu2 %v81_v20  ;;  %1158 = vmatpush.msra.mxu3 %v81_v20  ;;  %v1505_v20 = vld [vmem:[%s2376_s1] ss:$0 sm:$0xff]  ;;  %vm408_vm0 = vcmp.lt.s32.totalorder %v1500_v19, 8 }
  0x1d   :  { %103 = vmatpush.msra.mxu0 %v80_v21  ;;  %1159 = vmatpush.msra.mxu1 %v80_v21  ;;  %vm1523_vm4 = vmxor %vm408_vm0, %vm1248_vm3 }
  0x1e   :  { %1160 = vmatpush.msra.mxu2 %v80_v21  ;;  %1161 = vmatpush.msra.mxu3 %v80_v21 }
  0x1f   :  { %104 = vmatpush.msra.mxu0 %v79_v22  ;;  %1162 = vmatpush.msra.mxu1 %v79_v22 }
  0x20   :  { %1163 = vmatpush.msra.mxu2 %v79_v22  ;;  %1164 = vmatpush.msra.mxu3 %v79_v22 }
  0x21   :  { %231 = vperm.xlu2 %1180, %v168_v23   ;;  %226 = vperm.xlu1 %1179, %v167_v24   ;;  %v1513_v24 = vld [vmem:[%s2377_s3] ss:$0 sm:$0xff] }
  0x22   :  { %221 = vperm.xlu0 %1178, %v166_v25   ;;  %105 = vmatpush.msra.mxu0 %v78_v26 }
  0x23   :  { %1165 = vmatpush.msra.mxu1 %v78_v26  ;;  %1166 = vmatpush.msra.mxu2 %v78_v26 }
  0x24   :  { %1167 = vmatpush.msra.mxu3 %v78_v26  ;;  %106 = vmatpush.msra.mxu0 %v77_v27 }
  0x25   :  { %1168 = vmatpush.msra.mxu1 %v77_v27  ;;  %1169 = vmatpush.msra.mxu2 %v77_v27 }
  0x26   :  { %1170 = vmatpush.msra.mxu3 %v77_v27  ;;  %107 = vmatpush.msra.mxu0 %v76_v28 }
  0x27   :  { %1171 = vmatpush.msra.mxu1 %v76_v28  ;;  %1172 = vmatpush.msra.mxu2 %v76_v28 }
  0x28   :  { %1173 = vmatpush.msra.mxu3 %v76_v28  ;;  %108 = vmatmul.f32.vlgmr.msra.gmra.mxu0 %v60_v29 }
  0x29   :  { %120 = vmatmul.f32.vlgmr.msra.gmra.mxu1 %v64_v30  ;;  %132 = vmatmul.f32.vlgmr.msra.gmra.mxu2 %v68_v31 }
  0x2a   :  { %144 = vmatmul.f32.vlgmr.msra.gmra.mxu3 %v72_v32  ;;  %246 = vperm.xlu2 %1180, %v171_v33  }
  0x2b   :  { %241 = vperm.xlu1 %1179, %v170_v34   ;;  %236 = vperm.xlu0 %1178, %v169_v35  }
  0x30   :  { %111 = vmatmul.f32.gmra.mxu0 %v61_v36 }
  0x31   :  { %123 = vmatmul.f32.gmra.mxu1 %v65_v37  ;;  %135 = vmatmul.f32.gmra.mxu2 %v69_v38 }
  0x32   :  { %147 = vmatmul.f32.gmra.mxu3 %v73_v39  ;;  %342 = vperm.xlu2 %1180, %v322_v40  }
  0x33   :  { %339 = vperm.xlu1 %1179, %v321_v41   ;;  %251 = vperm.xlu0 %1178, %v172_v42  }
  0x38   :  { %114 = vmatmul.f32.gmra.mxu0 %v62_v43 }
  0x39   :  { %126 = vmatmul.f32.gmra.mxu1 %v66_v44  ;;  %138 = vmatmul.f32.gmra.mxu2 %v70_v45 }
  0x3a   :  { %150 = vmatmul.f32.gmra.mxu3 %v74_v46  ;;  %351 = vperm.xlu2 %1180, %v325_v47  }
  0x3b   :  { %348 = vperm.xlu1 %1179, %v324_v48   ;;  %345 = vperm.xlu0 %1178, %v323_v49  }
  0x40   :  { %117 = vmatmul.f32.gmra.mxu0 %v63_v50 }
  0x41   :  { %129 = vmatmul.f32.gmra.mxu1 %v67_v51  ;;  %141 = vmatmul.f32.gmra.mxu2 %v71_v52 }
  0x42   :  { %153 = vmatmul.f32.gmra.mxu3 %v75_v53  ;;  %360 = vperm.xlu2 %1180, %v328_v54  }
  0x43   :  { %357 = vperm.xlu1 %1179, %v327_v55   ;;  %354 = vperm.xlu0 %1178, %v326_v56  }
  0x4a   :  { %369 = vperm.xlu2 %1180, %v331_v57  }
  0x4b   :  { %366 = vperm.xlu1 %1179, %v330_v58   ;;  %363 = vperm.xlu0 %1178, %v329_v59  }
  0x52   :  { %378 = vperm.xlu2 %1180, %v334_v60  }
  0x53   :  { %375 = vperm.xlu1 %1179, %v333_v61   ;;  %372 = vperm.xlu0 %1178, %v332_v62  }
  0x5b   :  { %384 = vperm.xlu1 %1179, %v336_v63   ;;  %381 = vperm.xlu0 %1178, %v335_v0  }
  0x5e   :  { %v197_v1 = vpop.permute.xlu2 %196 }
  0x5f   :  { %v261_v23 = vadd.f32 %v1505_v20, %v197_v1 }
  0x68   :  { %v1478_v2 = vpop.permute.xlu2 %201 }
  0x71   :  { %v217_v5 = vpop.permute.xlu2 %216 }
  0x72   :  { %v265_v48 = vadd.f32 %v1505_v20, %v217_v5 }
  0x77   :  { %v1480_v3 = vpop.permute.xlu1 %186  ;;  %v177_v4 = vpop.permute.xlu0 %176 }
  0x78   :  { %v257_v27 = vadd.f32 %v1505_v20, %v177_v4 }
  0x7b   :  { %v1486_v8 = vpop.permute.xlu2 %231 }
  0x80   :  { %v1482_v6 = vpop.permute.xlu1 %191 }
  0x81   :  { %v1484_v7 = vpop.permute.xlu0 %181 }
  0x82   :  { %v258_v61 = vadd.f32 %v1505_v20, %v1484_v7 }
  0x84   :  { %v1492_v11 = vpop.permute.xlu2 %246 }
  0x8a   :  { %v1488_v9 = vpop.permute.xlu1 %211  ;;  %v1490_v10 = vpop.permute.xlu0 %206 }
  0x8c   :  { %v1498_v14 = vpop.permute.xlu2 %342 }
  0x8d   :  { %vm388_vm13 = vcmp.eq.s32.totalorder %v1498_v14, %v1513_v24 }
  0x93   :  { %v1494_v12 = vpop.permute.xlu1 %226 }
  0x94   :  { %v1496_v13 = vpop.permute.xlu0 %221  ;;  %v352_v18 = vpop.permute.xlu2 %351 }
  0x95   :  { %vm391_vm1 = vcmp.eq.s32.totalorder %v352_v18, %v1513_v24 }
  0x96   :  { %vm482_vm5 = vmor %vm391_vm1, %vm1523_vm4 }
  0x97   :  { %vm415_vm7 = vmand %vm391_vm1, %vm408_vm0 }
  0x9c   :  { %v1519_v32 = vpop.permute.xlu2 %360 }
  0x9d   :  { %v242_v15 = vpop.permute.xlu1 %241  ;;  %v237_v16 = vpop.permute.xlu0 %236 }
  0x9e   :  { %v270_v51 = vadd.f32 %v1505_v20, %v242_v15  ;;  %v269_v63 = vadd.f32 %v1505_v20, %v237_v16  ;;  %v266_v16 = vadd.f32 %v1505_v20, %v1496_v13 }
  0xa4   :  { %v1539_v41 = vpop.permute.xlu2 %369 }
  0xa5   :  { %v340_v21 = vpop.permute.xlu1 %339  ;;  %v1507_v22 = vpop.permute.xlu0 %251 }
  0xa6   :  { %v109_v25 = vpop.f32.mrf.mxu0  ;;  %v121_v26 = vpop.f32.mrf.mxu1  ;;  %vm387_vm2 = vcmp.eq.s32.totalorder %v340_v21, %v1513_v24 }
  0xa7   :  { %v273_v28 = vmul.f32 2.0, %v109_v25  ;;  %v277_v29 = vmul.f32 2.0, %v121_v26  ;;  %vm411_vm6 = vmand %vm387_vm2, %vm408_vm0 }
  0xa8   :  { %vm478_vm8 = vmor %vm387_vm2, %vm1523_vm4 }
  0xa9   :  { %v289_v30 = vsub.f32 %v257_v27, %v273_v28  ;;  %v293_v31 = vsub.f32 %v261_v23, %v277_v29  ;;  %vm412_vm2 = vmand %vm388_vm13, %vm408_vm0  ;;  %v262_v28 = vadd.f32 %v1505_v20, %v1478_v2 }
  0xab   :  { %v309_v34 = vmax.f32 %v293_v31, 1e-12  ;;  %v305_v35 = vmax.f32 %v289_v30, 1e-12  ;;  %v263_v31 = vadd.f32 %v1505_v20, %v1490_v10 }
  0xac   :  { %v133_v42 = vpop.f32.mrf.mxu2  ;;  %v1557_v59 = vpop.permute.xlu2 %378 }
  0xad   :  { %v145_v36 = vpop.f32.mrf.mxu3  ;;  %v1535_v37 = vpop.permute.xlu1 %348  ;;  %v498_v38 = vsel %vm482_vm5, inf, %v309_v34  ;;  %v427_v39 = vsel %vm411_vm6, %v305_v35, -inf  ;;  %v431_v44 = vsel %vm415_vm7, %v309_v34, -inf  ;;  %v281_v47 = vmul.f32 2.0, %v133_v42 }
  0xae   :  { %v1537_v40 = vpop.permute.xlu0 %345  ;;  %518 = vmin.xlane.f32.xlu0 %v498_v38  ;;  %443 = vmax.xlane.f32.xlu2 %v427_v39  ;;  %v112_v50 = vpop.f32.mrf.mxu0  ;;  %v494_v57 = vsel %vm478_vm8, inf, %v305_v35  ;;  %v285_v58 = vmul.f32 2.0, %v145_v36  ;;  %vm400_vm11 = vcmp.eq.s32.totalorder %v1557_v59, %v1513_v24 }
  0xaf   :  { %v297_v52 = vsub.f32 %v265_v48, %v281_v47  ;;  %v124_v53 = vpop.f32.mrf.mxu1  ;;  %v274_v54 = vmul.f32 2.0, %v112_v50  ;;  %vm424_vm12 = vmand %vm400_vm11, %vm408_vm0 }
  0xb0   :  { %v301_v15 = vsub.f32 %v269_v63, %v285_v58  ;;  %v278_v26 = vmul.f32 2.0, %v124_v53 }
  0xb1   :  { %v313_v62 = vmax.f32 %v297_v52, 1e-12  ;;  %v290_v1 = vsub.f32 %v258_v61, %v274_v54 }
  0xb2   :  { %v1585_v25 = vmax.f32 %v301_v15, 1e-12  ;;  %v294_v34 = vsub.f32 %v262_v28, %v278_v26 }
  0xb3   :  { %v306_v21 = vmax.f32 %v290_v1, 1e-12 }
  0xb4   :  { %v136_v0 = vpop.f32.mrf.mxu2  ;;  %v310_v10 = vmax.f32 %v294_v34, 1e-12  ;;  %v1249_v34 = vmov -inf  }
  0xb5   :  { %v1545_v43 = vpop.permute.xlu1 %357  ;;  %v148_v45 = vpop.f32.mrf.mxu3  ;;  %v282_v7 = vmul.f32 2.0, %v136_v0  ;;  %v428_v30 = vsel %vm412_vm2, %v306_v21, -inf }
  0xb6   :  { %v1547_v46 = vpop.permute.xlu0 %354  ;;  %451 = vmax.xlane.f32.xlu2 %v431_v44  ;;  %v286_v49 = vmul.f32 2.0, %v148_v45  ;;  %v115_v36 = vpop.f32.mrf.mxu0  ;;  %vm393_vm8 = vcmp.eq.s32.totalorder %v1545_v43, %v1513_v24 }
  0xb7   :  { %v127_v23 = vpop.f32.mrf.mxu1  ;;  %v298_v27 = vsub.f32 %v266_v16, %v282_v7  ;;  %vm392_vm5 = vcmp.eq.s32.totalorder %v1547_v46, %v1513_v24  ;;  %v264_v16 = vadd.f32 %v1505_v20, %v1488_v9 }
  0xb8   :  { %v302_v55 = vsub.f32 %v270_v51, %v286_v49  ;;  %v279_v29 = vmul.f32 2.0, %v127_v23  ;;  %vm416_vm7 = vmand %vm392_vm5, %vm408_vm0  ;;  %v267_v49 = vadd.f32 %v1505_v20, %v1494_v12  ;;  %v271_v12 = vadd.f32 %v1505_v20, %v1492_v11 }
  0xb9   :  { %v314_v35 = vmax.f32 %v298_v27, 1e-12  ;;  %v432_v47 = vsel %vm416_vm7, %v310_v10, -inf  ;;  %v260_v11 = vadd.f32 %v1505_v20, %v1482_v6  ;;  %v259_v6 = vadd.f32 %v1505_v20, %v1480_v3 }
  0xba   :  { %v1569_v5 = vmax.f32 %v302_v55, 1e-12  ;;  %v295_v2 = vsub.f32 %v263_v31, %v279_v29 }
  0xbc   :  { %v440_v18 = vsel %vm424_vm12, %v1569_v5, -inf  ;;  %v139_v39 = vpop.f32.mrf.mxu2  ;;  %v1624_v48 = vmax.f32 %v295_v2, 1e-12  ;;  %vm479_vm12 = vmor %vm388_vm13, %vm1523_vm4 }
  0xbd   :  { %v1555_v56 = vpop.permute.xlu1 %366  ;;  %v283_v45 = vmul.f32 2.0, %v139_v39  ;;  %v151_v50 = vpop.f32.mrf.mxu3  ;;  %v495_v58 = vsel %vm479_vm12, inf, %v306_v21  ;;  %vm394_vm12 = vcmp.eq.s32.totalorder %v1519_v32, %v1513_v24 }
  0xbe   :  { %v364_v60 = vpop.permute.xlu0 %363  ;;  %510 = vmin.xlane.f32.xlu2 %v494_v57  ;;  %vm396_vm15 = vcmp.eq.s32.totalorder %v1555_v56, %v1513_v24  ;;  %v118_v53 = vpop.f32.mrf.mxu0  ;;  %v287_v54 = vmul.f32 2.0, %v151_v50 }
  0xbf   :  { %vm395_vm9 = vcmp.eq.s32.totalorder %v364_v60, %v1513_v24  ;;  %vm487_vm3 = vmor %vm396_vm15, %vm1523_vm4  ;;  %v299_v51 = vsub.f32 %v267_v49, %v283_v45  ;;  %v276_v46 = vmul.f32 2.0, %v118_v53  ;;  %v130_v0 = vpop.f32.mrf.mxu1 }
  0xc0   :  { %vm419_vm10 = vmand %vm395_vm9, %vm408_vm0  ;;  %v503_v38 = vsel %vm487_vm3, inf, %v314_v35  ;;  %v303_v61 = vsub.f32 %v271_v12, %v287_v54  ;;  %v280_v7 = vmul.f32 2.0, %v130_v0 }
  0xc1   :  { %v435_v4 = vsel %vm419_vm10, %v313_v62, -inf  ;;  %vm486_vm6 = vmor %vm395_vm9, %vm1523_vm4  ;;  %v315_v60 = vmax.f32 %v299_v51, 1e-12  ;;  %v292_v14 = vsub.f32 %v260_v11, %v276_v46 }
  0xc2   :  { %459 = vmax.xlane.f32.xlu0 %v435_v4  ;;  %v502_v44 = vsel %vm486_vm6, inf, %v313_v62  ;;  %vm484_vm9 = vmor %vm393_vm8, %vm1523_vm4  ;;  %v275_v62 = vmul.f32 2.0, %v115_v36  ;;  %v1671_v1 = vmax.f32 %v303_v61, 1e-12  ;;  %vm390_vm6 = vcmp.eq.s32.totalorder %v1535_v37, %v1513_v24 }
  0xc3   :  { %v500_v52 = vsel %vm484_vm9, inf, %v1624_v48  ;;  %vm483_vm10 = vmor %vm392_vm5, %vm1523_vm4  ;;  %v308_v56 = vmax.f32 %v292_v14, 1e-12  ;;  %v296_v21 = vsub.f32 %v264_v16, %v280_v7  ;;  %v272_v37 = vadd.f32 %v1505_v20, %v1507_v22 }
  0xc4   :  { %v499_v57 = vsel %vm483_vm10, inf, %v310_v10  ;;  %vm420_vm3 = vmand %vm396_vm15, %vm408_vm0  ;;  %v291_v4 = vsub.f32 %v259_v6, %v275_v62  ;;  %vm389_vm15 = vcmp.eq.s32.totalorder %v1537_v40, %v1513_v24 }
  0xc5   :  { %v1580_v17 = vpop.permute.xlu1 %375  ;;  %v436_v15 = vsel %vm420_vm3, %v314_v35, -inf  ;;  %vm414_vm7 = vmand %vm390_vm6, %vm408_vm0  ;;  %v312_v26 = vmax.f32 %v296_v21, 1e-12 }
  0xc6   :  { %vm399_vm14 = vcmp.eq.s32.totalorder %v1580_v17, %v1513_v24  ;;  %469 = vmax.xlane.f32.xlu2 %v440_v18  ;;  %v1615_v42 = vpop.permute.xlu0 %372  ;;  %v307_v18 = vmax.f32 %v291_v4, 1e-12  ;;  %v430_v23 = vsel %vm414_vm7, %v308_v56, -inf  ;;  %vm413_vm9 = vmand %vm389_vm15, %vm408_vm0 }
  0xc7   :  { %vm423_vm1 = vmand %vm399_vm14, %vm408_vm0  ;;  %vm398_vm7 = vcmp.eq.s32.totalorder %v1615_v42, %v1513_v24 }
  0xc8   :  { %v439_v13 = vsel %vm423_vm1, %v1585_v25, -inf  ;;  %vm397_vm1 = vcmp.eq.s32.totalorder %v1539_v41, %v1513_v24  ;;  %v429_v9 = vsel %vm413_vm9, %v307_v18, -inf  ;;  %vm485_vm3 = vmor %vm394_vm12, %vm1523_vm4 }
  0xc9   :  { %467 = vmax.xlane.f32.xlu1 %v439_v13  ;;  %vm421_vm13 = vmand %vm397_vm1, %vm408_vm0  ;;  %v142_v13 = vpop.f32.mrf.mxu2  ;;  %v501_v31 = vsel %vm485_vm3, inf, %v312_v26 }
  0xca   :  { %445 = vmax.xlane.f32.xlu0 %v428_v30  ;;  %v437_v63 = vsel %vm421_vm13, %v315_v60, -inf  ;;  %vm488_vm10 = vmor %vm397_vm1, %vm1523_vm4  ;;  %v284_v28 = vmul.f32 2.0, %v142_v13  ;;  %v268_v30 = vadd.f32 %v1505_v20, %v1486_v8  ;;  %v154_v8 = vpop.f32.mrf.mxu3 }
  0xcb   :  { %v504_v27 = vsel %vm488_vm10, inf, %v315_v60  ;;  %vm418_vm13 = vmand %vm394_vm12, %vm408_vm0  ;;  %v288_v36 = vmul.f32 2.0, %v154_v8 }
  0xcc   :  { %v434_v29 = vsel %vm418_vm13, %v312_v26, -inf  ;;  %vm417_vm1 = vmand %vm393_vm8, %vm408_vm0  ;;  %v300_v41 = vsub.f32 %v268_v30, %v284_v28 }
  0xcd   :  { %v433_v32 = vsel %vm417_vm1, %v1624_v48, -inf  ;;  %vm481_vm8 = vmor %vm390_vm6, %vm1523_vm4  ;;  %v385_v2 = vpop.permute.xlu1 %384  ;;  %v304_v40 = vsub.f32 %v272_v37, %v288_v36 }
  0xce   :  { %528 = vmin.xlane.f32.xlu2 %v503_v38  ;;  %v1641_v55 = vpop.permute.xlu0 %381  ;;  %v316_v43 = vmax.f32 %v300_v41, 1e-12  ;;  %v497_v35 = vsel %vm481_vm8, inf, %v308_v56  ;;  %vm480_vm6 = vmor %vm389_vm15, %vm1523_vm4  ;;  %vm402_vm15 = vcmp.eq.s32.totalorder %v385_v2, %v1513_v24 }
  0xcf   :  { %vm401_vm2 = vcmp.eq.s32.totalorder %v1641_v55, %v1513_v24  ;;  %v496_v38 = vsel %vm480_vm6, inf, %v307_v18  ;;  %vm422_vm9 = vmand %vm398_vm7, %vm408_vm0  ;;  %v320_v22 = vmax.f32 %v304_v40, 1e-12 }
  0xd0   :  { %vm425_vm5 = vmand %vm401_vm2, %vm408_vm0  ;;  %v438_v39 = vsel %vm422_vm9, %v316_v43, -inf }
  0xd1   :  { %526 = vmin.xlane.f32.xlu1 %v502_v44  ;;  %v441_v3 = vsel %vm425_vm5, %v1671_v1, -inf  ;;  %vm27_vm5 = vcmask 7168   ;;  %vm490_vm10 = vmor %vm399_vm14, %vm1523_vm4 }
  0xd2   :  { %453 = vmax.xlane.f32.xlu0 %v432_v47  ;;  %28 = vst.msk [vmem:[#allocation2] sm:$0xff] %vm27_vm5, %v1249_v34  ;;  %v506_v20 = vsel %vm490_vm10, inf, %v1585_v25  ;;  %vm426_vm12 = vmand %vm402_vm15, %vm408_vm0  ;;  %v1250_v25 = vmov inf  }
  0xd3   :  { %29 = vst.msk [vmem:[#allocation2 + $0x8] sm:$0xff] %vm27_vm5, %v1249_v34  ;;  %v442_v17 = vsel %vm426_vm12, %v320_v22, -inf  ;;  %vm491_vm14 = vmor %vm400_vm11, %vm1523_vm4 }
  0xd4   :  { %30 = vst.msk [vmem:[#allocation2 + $0x10] sm:$0xff] %vm27_vm5, %v1249_v34  ;;  %v507_v19 = vsel %vm491_vm14, inf, %v1569_v5  ;;  %vm493_vm0 = vmor %vm402_vm15, %vm1523_vm4 }
  0xd5   :  { %31 = vst.msk [vmem:[#allocation2 + $0x18] sm:$0xff] %vm27_vm5, %v1249_v34  ;;  %v509_v59 = vsel %vm493_vm0, inf, %v320_v22  ;;  %vm489_vm11 = vmor %vm398_vm7, %vm1523_vm4 }
  0xd6   :  { %522 = vmin.xlane.f32.xlu2 %v500_v52  ;;  %32 = vst.msk [vmem:[#allocation2 + $0x20] sm:$0xff] %vm27_vm5, %v1249_v34  ;;  %v505_v5 = vsel %vm489_vm11, inf, %v316_v43  ;;  %vm492_vm13 = vmor %vm401_vm2, %vm1523_vm4 }
  0xd7   :  { %33 = vst.msk [vmem:[#allocation2 + $0x28] sm:$0xff] %vm27_vm5, %v1249_v34  ;;  %v508_v42 = vsel %vm492_vm13, inf, %v1671_v1 }
  0xd8   :  { %34 = vst.msk [vmem:[#allocation2 + $0x30] sm:$0xff] %vm27_vm5, %v1249_v34 }
  0xd9   :  { %520 = vmin.xlane.f32.xlu1 %v499_v57  ;;  %35 = vst.msk [vmem:[#allocation2 + $0x38] sm:$0xff] %vm27_vm5, %v1249_v34  ;;  %v542_v10 = vld [vmem:[#allocation2] sm:$0xff] }
  0xda   :  { %512 = vmin.xlane.f32.xlu0 %v495_v58  ;;  %36 = vst.msk [vmem:[#allocation2 + $0x40] sm:$0xff] %vm27_vm5, %v1249_v34  ;;  %v543_v18 = vld [vmem:[#allocation2 + $0x8] sm:$0xff] }
  0xdb   :  { %37 = vst.msk [vmem:[#allocation2 + $0x48] sm:$0xff] %vm27_vm5, %v1249_v34 }
  0xdc   :  { %38 = vst.msk [vmem:[#allocation2 + $0x50] sm:$0xff] %vm27_vm5, %v1249_v34 }
  0xdd   :  { %39 = vst.msk [vmem:[#allocation2 + $0x58] sm:$0xff] %vm27_vm5, %v1249_v34  ;;  %v546_v48 = vld [vmem:[#allocation2 + $0x20] sm:$0xff] }
  0xde   :  { %463 = vmax.xlane.f32.xlu2 %v437_v63  ;;  %40 = vst.msk [vmem:[#allocation2 + $0x60] sm:$0xff] %vm27_vm5, %v1249_v34 }
  0xdf   :  { %41 = vst.msk [vmem:[#allocation2 + $0x68] sm:$0xff] %vm27_vm5, %v1249_v34 }
  0xe0   :  { %42 = vst.msk [vmem:[#allocation2 + $0x70] sm:$0xff] %vm27_vm5, %v1249_v34 }
  0xe1   :  { %461 = vmax.xlane.f32.xlu1 %v436_v15  ;;  %43 = vst.msk [vmem:[#allocation2 + $0x78] sm:$0xff] %vm27_vm5, %v1249_v34  ;;  %v550_v58 = vld [vmem:[#allocation2 + $0x40] sm:$0xff] }
  0xe2   :  { %471 = vmax.xlane.f32.xlu0 %v441_v3  ;;  %48 = vst.msk [vmem:[#allocation3 + $0x20] sm:$0xff] %vm27_vm5, %v1250_v25 }
  0xe3   :  { %44 = vst.msk [vmem:[#allocation3] sm:$0xff] %vm27_vm5, %v1250_v25 }
  0xe4   :  { %45 = vst.msk [vmem:[#allocation3 + $0x8] sm:$0xff] %vm27_vm5, %v1250_v25 }
  0xe5   :  { %46 = vst.msk [vmem:[#allocation3 + $0x10] sm:$0xff] %vm27_vm5, %v1250_v25  ;;  %v554_v7 = vld [vmem:[#allocation2 + $0x60] sm:$0xff] }
  0xe6   :  { %449 = vmax.xlane.f32.xlu2 %v430_v23  ;;  %47 = vst.msk [vmem:[#allocation3 + $0x18] sm:$0xff] %vm27_vm5, %v1250_v25  ;;  %v555_v63 = vld [vmem:[#allocation2 + $0x68] sm:$0xff] }
  0xe7   :  { %49 = vst.msk [vmem:[#allocation3 + $0x28] sm:$0xff] %vm27_vm5, %v1250_v25 }
  0xe8   :  { %50 = vst.msk [vmem:[#allocation3 + $0x30] sm:$0xff] %vm27_vm5, %v1250_v25 }
  0xe9   :  { %447 = vmax.xlane.f32.xlu1 %v429_v9  ;;  %51 = vst.msk [vmem:[#allocation3 + $0x38] sm:$0xff] %vm27_vm5, %v1250_v25  ;;  %v595_v44 = vld [vmem:[#allocation3 + $0x20] sm:$0xff] }
  0xea   :  { %530 = vmin.xlane.f32.xlu0 %v504_v27  ;;  %52 = vst.msk [vmem:[#allocation3 + $0x40] sm:$0xff] %vm27_vm5, %v1250_v25  ;;  %v591_v53 = vld [vmem:[#allocation3] sm:$0xff] }
  0xeb   :  { %53 = vst.msk [vmem:[#allocation3 + $0x48] sm:$0xff] %vm27_vm5, %v1250_v25 }
  0xec   :  { %54 = vst.msk [vmem:[#allocation3 + $0x50] sm:$0xff] %vm27_vm5, %v1250_v25 }
  0xed   :  { %55 = vst.msk [vmem:[#allocation3 + $0x58] sm:$0xff] %vm27_vm5, %v1250_v25 }
  0xee   :  { %457 = vmax.xlane.f32.xlu2 %v434_v29  ;;  %56 = vst.msk [vmem:[#allocation3 + $0x60] sm:$0xff] %vm27_vm5, %v1250_v25 }
  0xef   :  { %57 = vst.msk [vmem:[#allocation3 + $0x68] sm:$0xff] %vm27_vm5, %v1250_v25 }
  0xf0   :  { %58 = vst.msk [vmem:[#allocation3 + $0x70] sm:$0xff] %vm27_vm5, %v1250_v25 }
  0xf1   :  { %455 = vmax.xlane.f32.xlu1 %v433_v32  ;;  %59 = vst.msk [vmem:[#allocation3 + $0x78] sm:$0xff] %vm27_vm5, %v1250_v25  ;;  %v599_v36 = vld [vmem:[#allocation3 + $0x40] sm:$0xff] }
  0xf2   :  { %524 = vmin.xlane.f32.xlu0 %v501_v31  ;;  %v600_v32 = vld [vmem:[#allocation3 + $0x48] sm:$0xff] }
  0xf6   :  { %516 = vmin.xlane.f32.xlu2 %v497_v35 }
  0xf9   :  { %514 = vmin.xlane.f32.xlu1 %v496_v38  ;;  %v547_v38 = vld [vmem:[#allocation2 + $0x28] sm:$0xff] }
  0xfa   :  { %465 = vmax.xlane.f32.xlu0 %v438_v39 }
  0xfe   :  { %534 = vmin.xlane.f32.xlu2 %v506_v20 }
 0x101   :  { %473 = vmax.xlane.f32.xlu1 %v442_v17 }
 0x102   :  { %536 = vmin.xlane.f32.xlu0 %v507_v19 }
 0x106   :  { %540 = vmin.xlane.f32.xlu2 %v509_v59 }
 0x109   :  { %532 = vmin.xlane.f32.xlu1 %v505_v5 }
 0x111   :  { %538 = vmin.xlane.f32.xlu1 %v508_v42 }
 0x121   :  { %v444_v33 = vpop.xlane.xlu2 %443  ;;  %v519_v45 = vpop.xlane.xlu0 %518 }
 0x122   :  { %v558_v47 = vmax.f32 %v542_v10, %v444_v33  ;;  %v611_v24 = vmin.f32 %v595_v44, %v519_v45 }
 0x124   :  { %575 = vst.msk [vmem:[#allocation2] sm:$0xff] %vm27_vm5, %v558_v47 }
 0x125   :  { %627 = vst.msk [vmem:[#allocation3 + $0x20] sm:$0xff] %vm27_vm5, %v611_v24 }
 0x129   :  { %v452_v49 = vpop.xlane.xlu2 %451 }
 0x12a   :  { %v562_v50 = vmax.f32 %v546_v48, %v452_v49  ;;  %v597_v48 = vld [vmem:[#allocation3 + $0x30] sm:$0xff] }
 0x12b   :  { %v1794_v51 = vld [vmem:[#allocation2] sm:$0xff] }
 0x12c   :  { %1183 = vrsqrt.f32 %v1794_v51  ;;  %v1797_v52 = vld [vmem:[#allocation3 + $0x20] sm:$0xff]  ;;  %579 = vst.msk [vmem:[#allocation2 + $0x20] sm:$0xff] %vm27_vm5, %v562_v50  ;;  %vm665_vm8 = vcmp.eq.f32.partialorder %v1794_v51, inf  ;;  %vm667_vm6 = vcmp.eq.f32.partialorder %v1794_v51, 0.0 }
 0x12d   :  { %1185 = vrsqrt.f32 %v1797_v52  ;;  %vm921_vm4 = vcmp.eq.f32.partialorder %v1797_v52, inf  ;;  %vm923_vm2 = vcmp.eq.f32.partialorder %v1797_v52, 0.0  ;;  %v924_v42 = vand.u32 2147483648, %v1797_v52 }
 0x131   :  { %v511_v54 = vpop.xlane.xlu2 %510 }
 0x132   :  { %v1184_v12 = vpop.eup %1183  ;;  %v607_v55 = vmin.f32 %v591_v53, %v511_v54 }
 0x133   :  { %v1186_v57 = vpop.eup %1185  ;;  %v1801_v46 = vld [vmem:[#allocation2 + $0x20] sm:$0xff]  ;;  %v659_v60 = vmul.f32 %v1184_v12, %v1794_v51 }
 0x134   :  { %v915_v11 = vmul.f32 %v1186_v57, %v1797_v52  ;;  %1187 = vrsqrt.f32 %v1801_v46  ;;  %623 = vst.msk [vmem:[#allocation3] sm:$0xff] %vm27_vm5, %v607_v55  ;;  %vm713_vm1 = vcmp.eq.f32.partialorder %v1801_v46, inf  ;;  %v716_v10 = vand.u32 2147483648, %v1801_v46 }
 0x135   :  { %v460_v61 = vpop.xlane.xlu0 %459  ;;  %v660_v6 = vmul.f32 %v1184_v12, %v659_v60  ;;  %vm715_vm3 = vcmp.eq.f32.partialorder %v1801_v46, 0.0 }
 0x136   :  { %v916_v62 = vmul.f32 %v1186_v57, %v915_v11  ;;  %v566_v14 = vmax.f32 %v550_v58, %v460_v61  ;;  %v596_v61 = vld [vmem:[#allocation3 + $0x28] sm:$0xff] }
 0x137   :  { %v661_v21 = vmul.f32 0.5, %v660_v6 }
 0x138   :  { %v917_v0 = vmul.f32 0.5, %v916_v62  ;;  %583 = vst.msk [vmem:[#allocation2 + $0x40] sm:$0xff] %vm27_vm5, %v566_v14  ;;  %v668_v62 = vand.u32 2147483648, %v1794_v51 }
 0x139   :  { %v470_v1 = vpop.xlane.xlu2 %469  ;;  %v662_v41 = vsub.f32 1.5, %v661_v21 }
 0x13a   :  { %v1188_v4 = vpop.eup %1187  ;;  %v918_v15 = vsub.f32 1.5, %v917_v0  ;;  %v571_v56 = vmax.f32 %v555_v63, %v470_v1 }
 0x13b   :  { %v707_v3 = vmul.f32 %v1188_v4, %v1801_v46  ;;  %v1809_v16 = vld [vmem:[#allocation3] sm:$0xff]  ;;  %v663_v39 = vmul.f32 %v1184_v12, %v662_v41 }
 0x13c   :  { %1189 = vrsqrt.f32 %v1809_v16  ;;  %588 = vst.msk [vmem:[#allocation2 + $0x68] sm:$0xff] %vm27_vm5, %v571_v56  ;;  %v468_v23 = vpop.xlane.xlu1 %467  ;;  %v919_v9 = vmul.f32 %v1186_v57, %v918_v15  ;;  %vm873_vm7 = vcmp.eq.f32.partialorder %v1809_v16, inf  ;;  %v876_v56 = vand.u32 2147483648, %v1809_v16 }
 0x13d   :  { %v708_v26 = vmul.f32 %v1188_v4, %v707_v3  ;;  %v570_v27 = vmax.f32 %v554_v7, %v468_v23  ;;  %v446_v13 = vpop.xlane.xlu0 %445  ;;  %v664_v49 = vmul.f32 %v663_v39, %v1794_v51  ;;  %vm875_vm9 = vcmp.eq.f32.partialorder %v1809_v16, 0.0 }
 0x13e   :  { %v559_v28 = vmax.f32 %v543_v18, %v446_v13  ;;  %v920_v31 = vmul.f32 %v919_v9, %v1797_v52 }
 0x13f   :  { %v709_v29 = vmul.f32 0.5, %v708_v26  ;;  %v1813_v30 = vld [vmem:[#allocation2 + $0x40] sm:$0xff]  ;;  %587 = vst.msk [vmem:[#allocation2 + $0x60] sm:$0xff] %vm27_vm5, %v570_v27  ;;  %v666_v63 = vsel %vm665_vm8, %v1794_v51, %v664_v49 }
 0x140   :  { %1191 = vrsqrt.f32 %v1813_v30  ;;  %576 = vst.msk [vmem:[#allocation2 + $0x8] sm:$0xff] %vm27_vm5, %v559_v28  ;;  %v922_v20 = vsel %vm921_vm4, %v1797_v52, %v920_v31  ;;  %v592_v52 = vld [vmem:[#allocation3 + $0x8] sm:$0xff]  ;;  %v669_v26 = vsel %vm667_vm6, %v668_v62, %v666_v63  ;;  %vm761_vm15 = vcmp.eq.f32.partialorder %v1813_v30, inf  ;;  %v556_v62 = vld [vmem:[#allocation2 + $0x70] sm:$0xff] }
 0x141   :  { %v710_v34 = vsub.f32 1.5, %v709_v29  ;;  %v529_v8 = vpop.xlane.xlu2 %528  ;;  %v925_v50 = vsel %vm923_vm2, %v924_v42, %v922_v20  ;;  %vm763_vm10 = vcmp.eq.f32.partialorder %v1813_v30, 0.0 }
 0x142   :  { %v1190_v43 = vpop.eup %1189  ;;  %v616_v35 = vmin.f32 %v600_v32, %v529_v8 }
 0x143   :  { %v711_v2 = vmul.f32 %v1188_v4, %v710_v34  ;;  %v867_v37 = vmul.f32 %v1190_v43, %v1809_v16  ;;  %v1825_v19 = vld [vmem:[#allocation2 + $0x68] sm:$0xff] }
 0x144   :  { %632 = vst.msk [vmem:[#allocation3 + $0x48] sm:$0xff] %vm27_vm5, %v616_v35  ;;  %v527_v40 = vpop.xlane.xlu1 %526  ;;  %1193 = vrsqrt.f32 %v1825_v19  ;;  %vm821_vm2 = vcmp.eq.f32.partialorder %v1825_v19, inf }
 0x145   :  { %v712_v22 = vmul.f32 %v711_v2, %v1801_v46  ;;  %v868_v17 = vmul.f32 %v1190_v43, %v867_v37  ;;  %v615_v25 = vmin.f32 %v599_v36, %v527_v40  ;;  %v454_v59 = vpop.xlane.xlu0 %453 }
 0x146   :  { %v1827_v5 = vpop.eup %1191  ;;  %v563_v44 = vmax.f32 %v547_v38, %v454_v59  ;;  %v1846_v11 = vld [vmem:[#allocation2 + $0x60] sm:$0xff] }
 0x147   :  { %v714_v33 = vsel %vm713_vm1, %v1801_v46, %v712_v22  ;;  %v869_v45 = vmul.f32 0.5, %v868_v17  ;;  %v755_v47 = vmul.f32 %v1827_v5, %v1813_v30  ;;  %v1836_v24 = vld [vmem:[#allocation2 + $0x8] sm:$0xff]  ;;  %631 = vst.msk [vmem:[#allocation3 + $0x40] sm:$0xff] %vm27_vm5, %v615_v25 }
 0x148   :  { %v717_v53 = vsel %vm715_vm3, %v716_v10, %v714_v33  ;;  %580 = vst.msk [vmem:[#allocation2 + $0x28] sm:$0xff] %vm27_vm5, %v563_v44  ;;  %1195 = vrsqrt.f32 %v1836_v24  ;;  %vm677_vm0 = vcmp.eq.f32.partialorder %v1836_v24, inf  ;;  %vm679_vm11 = vcmp.eq.f32.partialorder %v1836_v24, 0.0 }
 0x149   :  { %v1062_v54 = vsub.f32 %v717_v53, %v925_v50  ;;  %v870_v12 = vsub.f32 1.5, %v869_v45  ;;  %v756_v55 = vmul.f32 %v1827_v5, %v755_v47  ;;  %v523_v57 = vpop.xlane.xlu2 %522  ;;  %1197 = vrsqrt.f32 %v1846_v11  ;;  %v552_v53 = vld [vmem:[#allocation2 + $0x50] sm:$0xff] }
 0x14a   :  { %v613_v46 = vmin.f32 %v597_v48, %v523_v57  ;;  %v1854_v15 = vpop.eup %1193  ;;  %v764_v47 = vand.u32 2147483648, %v1813_v30 }
 0x14b   :  { %v1078_v58 = vadd.f32 0.3, %v1062_v54  ;;  %v871_v60 = vmul.f32 %v1190_v43, %v870_v12  ;;  %v757_v1 = vmul.f32 0.5, %v756_v55  ;;  %v1875_v28 = vld [vmem:[#allocation3 + $0x48] sm:$0xff]  ;;  %v815_v32 = vmul.f32 %v1854_v15, %v1825_v19 }
 0x14c   :  { %629 = vst.msk [vmem:[#allocation3 + $0x30] sm:$0xff] %vm27_vm5, %v613_v46  ;;  %v521_v14 = vpop.xlane.xlu1 %520  ;;  %v551_v46 = vld [vmem:[#allocation2 + $0x48] sm:$0xff] }
 0x14d   :  { %v1094_v6 = vmax.f32 %v1078_v58, 0.0  ;;  %v872_v0 = vmul.f32 %v871_v60, %v1809_v16  ;;  %v513_v4 = vpop.xlane.xlu0 %512  ;;  %v612_v3 = vmin.f32 %v596_v61, %v521_v14  ;;  %v758_v13 = vsub.f32 1.5, %v757_v1  ;;  %v545_v14 = vld [vmem:[#allocation2 + $0x18] sm:$0xff]  ;;  %v601_v1 = vld [vmem:[#allocation3 + $0x50] sm:$0xff] }
 0x14e   :  { %v1858_v7 = vld [vmem:[#allocation3 + $0x40] sm:$0xff]  ;;  %v608_v18 = vmin.f32 %v592_v52, %v513_v4  ;;  %v1860_v21 = vpop.eup %1195  ;;  %v816_v2 = vmul.f32 %v1854_v15, %v815_v32 }
 0x14f   :  { %1110 = vst.msk [vmem:[%s2380_s6 + $0x20] sm:$0xff] %vm27_vm5, %v1094_v6  ;;  %v874_v23 = vsel %vm873_vm7, %v1809_v16, %v872_v0  ;;  %1199 = vrsqrt.f32 %v1858_v7  ;;  %v1872_v9 = vld [vmem:[#allocation2 + $0x28] sm:$0xff]  ;;  %v671_v16 = vmul.f32 %v1860_v21, %v1836_v24  ;;  %v1885_v31 = vpop.eup %1197  ;;  %v759_v35 = vmul.f32 %v1827_v5, %v758_v13  ;;  %v544_v0 = vld [vmem:[#allocation2 + $0x10] sm:$0xff] }
 0x150   :  { %v877_v27 = vsel %vm875_vm9, %v876_v56, %v874_v23  ;;  %628 = vst.msk [vmem:[#allocation3 + $0x28] sm:$0xff] %vm27_vm5, %v612_v3  ;;  %1201 = vrsqrt.f32 %v1872_v9  ;;  %v803_v20 = vmul.f32 %v1885_v31, %v1846_v11  ;;  %v1908_v42 = vmul.f32 0.5, %v816_v2 }
 0x151   :  { %v1058_v51 = vsub.f32 %v669_v26, %v877_v27  ;;  %624 = vst.msk [vmem:[#allocation3 + $0x8] sm:$0xff] %vm27_vm5, %v608_v18  ;;  %v1878_v29 = vpop.xlane.xlu2 %463  ;;  %1203 = vrsqrt.f32 %v1875_v28  ;;  %v672_v37 = vmul.f32 %v1860_v21, %v671_v16  ;;  %v760_v17 = vmul.f32 %v759_v35, %v1813_v30  ;;  %v549_v26 = vld [vmem:[#allocation2 + $0x38] sm:$0xff] }
 0x152   :  { %v804_v48 = vmul.f32 %v1885_v31, %v803_v20  ;;  %v818_v60 = vsub.f32 1.5, %v1908_v42  ;;  %vm969_vm12 = vcmp.eq.f32.partialorder %v1858_v7, inf  ;;  %vm971_vm14 = vcmp.eq.f32.partialorder %v1858_v7, 0.0 }
 0x153   :  { %v1074_v41 = vadd.f32 0.3, %v1058_v51  ;;  %v673_v10 = vmul.f32 0.5, %v672_v37  ;;  %v1917_v50 = vld [vmem:[#allocation3 + $0x30] sm:$0xff]  ;;  %v762_v12 = vsel %vm761_vm15, %v1813_v30, %v760_v17  ;;  %v568_v6 = vmax.f32 %v552_v53, %v1878_v29 }
 0x154   :  { %v1888_v34 = vpop.xlane.xlu1 %461  ;;  %v765_v56 = vsel %vm763_vm10, %v764_v47, %v762_v12  ;;  %v972_v18 = vand.u32 2147483648, %v1858_v7  ;;  %vm725_vm13 = vcmp.eq.f32.partialorder %v1872_v9, inf  ;;  %vm727_vm1 = vcmp.eq.f32.partialorder %v1872_v9, 0.0 }
 0x155   :  { %v1200_v8 = vpop.eup %1199  ;;  %v1090_v43 = vmax.f32 %v1074_v41, 0.0  ;;  %v1891_v36 = vpop.xlane.xlu0 %471  ;;  %v674_v61 = vsub.f32 1.5, %v673_v10  ;;  %v567_v23 = vmax.f32 %v551_v46, %v1888_v34  ;;  %585 = vst.msk [vmem:[#allocation2 + $0x50] sm:$0xff] %vm27_vm5, %v568_v6  ;;  %v819_v10 = vmul.f32 %v1854_v15, %v818_v60 }
 0x156   :  { %v963_v38 = vmul.f32 %v1200_v8, %v1858_v7  ;;  %v1202_v40 = vpop.eup %1201  ;;  %v572_v13 = vmax.f32 %v556_v62, %v1891_v36  ;;  %v728_v6 = vand.u32 2147483648, %v1872_v9  ;;  %vm823_vm7 = vcmp.eq.f32.partialorder %v1825_v19, 0.0 }
 0x157   :  { %1106 = vst.msk [vmem:[%s2380_s6] sm:$0xff] %vm27_vm5, %v1090_v43  ;;  %v1900_v39 = vld [vmem:[#allocation3 + $0x28] sm:$0xff]  ;;  %v719_v25 = vmul.f32 %v1202_v40, %v1872_v9  ;;  %v1906_v5 = vpop.eup %1203  ;;  %v675_v30 = vmul.f32 %v1860_v21, %v674_v61  ;;  %vm809_vm9 = vcmp.eq.f32.partialorder %v1846_v11, inf  ;;  %vm981_vm15 = vcmp.eq.f32.partialorder %v1875_v28, inf }
 0x158   :  { %v964_v22 = vmul.f32 %v1200_v8, %v963_v38  ;;  %1205 = vrsqrt.f32 %v1900_v39  ;;  %v1911_v33 = vld [vmem:[#allocation3 + $0x8] sm:$0xff]  ;;  %v975_v55 = vmul.f32 %v1906_v5, %v1875_v28  ;;  %584 = vst.msk [vmem:[#allocation2 + $0x48] sm:$0xff] %vm27_vm5, %v567_v23  ;;  %vm933_vm4 = vcmp.eq.f32.partialorder %v1900_v39, inf }
 0x159   :  { %v450_v59 = vpop.xlane.xlu2 %449  ;;  %v720_v45 = vmul.f32 %v1202_v40, %v719_v25  ;;  %1207 = vrsqrt.f32 %v1911_v33  ;;  %589 = vst.msk [vmem:[#allocation2 + $0x70] sm:$0xff] %vm27_vm5, %v572_v13  ;;  %v1950_v25 = vmul.f32 0.5, %v804_v48  ;;  %v676_v47 = vmul.f32 %v675_v30, %v1836_v24 }
 0x15a   :  { %v965_v44 = vmul.f32 0.5, %v964_v22  ;;  %1209 = vrsqrt.f32 %v1917_v50  ;;  %v976_v27 = vmul.f32 %v1906_v5, %v975_v55  ;;  %v561_v29 = vmax.f32 %v545_v14, %v450_v59  ;;  %v598_v22 = vld [vmem:[#allocation3 + $0x38] sm:$0xff] }
 0x15b   :  { %v721_v57 = vmul.f32 0.5, %v720_v45  ;;  %v806_v46 = vsub.f32 1.5, %v1950_v25  ;;  %v678_v14 = vsel %vm677_vm0, %v1836_v24, %v676_v47  ;;  %vm935_vm3 = vcmp.eq.f32.partialorder %v1900_v39, 0.0 }
 0x15c   :  { %v966_v49 = vsub.f32 1.5, %v965_v44  ;;  %v448_v54 = vpop.xlane.xlu1 %447  ;;  %578 = vst.msk [vmem:[#allocation2 + $0x18] sm:$0xff] %vm27_vm5, %v561_v29  ;;  %vm885_vm8 = vcmp.eq.f32.partialorder %v1911_v33, inf  ;;  %vm887_vm6 = vcmp.eq.f32.partialorder %v1911_v33, 0.0  ;;  %vm983_vm10 = vcmp.eq.f32.partialorder %v1875_v28, 0.0 }
 0x15d   :  { %v531_v58 = vpop.xlane.xlu0 %530  ;;  %v722_v63 = vsub.f32 1.5, %v721_v57  ;;  %v560_v41 = vmax.f32 %v544_v0, %v448_v54  ;;  %v680_v54 = vand.u32 2147483648, %v1836_v24  ;;  %v1962_v57 = vld [vmem:[#allocation2 + $0x50] sm:$0xff] }
 0x15e   :  { %v967_v52 = vmul.f32 %v1200_v8, %v966_v49  ;;  %v1206_v4 = vpop.eup %1205  ;;  %v617_v34 = vmin.f32 %v601_v1, %v531_v58  ;;  %v548_v8 = vld [vmem:[#allocation2 + $0x30] sm:$0xff]  ;;  %1211 = vrsqrt.f32 %v1962_v57 }
 0x15f   :  { %v927_v51 = vmul.f32 %v1206_v4, %v1900_v39  ;;  %v1208_v43 = vpop.eup %1207  ;;  %v723_v2 = vmul.f32 %v1202_v40, %v722_v63  ;;  %577 = vst.msk [vmem:[#allocation2 + $0x10] sm:$0xff] %vm27_vm5, %v560_v41  ;;  %v1967_v61 = vld [vmem:[#allocation2 + $0x48] sm:$0xff] }
 0x160   :  { %v968_v3 = vmul.f32 %v967_v52, %v1858_v7  ;;  %v879_v38 = vmul.f32 %v1208_v43, %v1911_v33  ;;  %v1948_v17 = vpop.eup %1209  ;;  %633 = vst.msk [vmem:[#allocation3 + $0x50] sm:$0xff] %vm27_vm5, %v617_v34  ;;  %v1971_v52 = vmul.f32 %v819_v10, %v1825_v19  ;;  %1213 = vrsqrt.f32 %v1967_v61 }
 0x161   :  { %v458_v32 = vpop.xlane.xlu2 %457  ;;  %v928_v37 = vmul.f32 %v1206_v4, %v927_v51  ;;  %v724_v49 = vmul.f32 %v723_v2, %v1872_v9  ;;  %v939_v15 = vmul.f32 %v1948_v17, %v1917_v50  ;;  %vm775_vm0 = vcmp.eq.f32.partialorder %v1967_v61, 0.0 }
 0x162   :  { %v970_v16 = vsel %vm969_vm12, %v1858_v7, %v968_v3  ;;  %v565_v36 = vmax.f32 %v549_v26, %v458_v32  ;;  %v977_v7 = vmul.f32 0.5, %v976_v27  ;;  %v880_v45 = vmul.f32 %v1208_v43, %v879_v38 }
 0x163   :  { %v973_v35 = vsel %vm971_vm14, %v972_v18, %v970_v16  ;;  %v929_v59 = vmul.f32 0.5, %v928_v37  ;;  %v726_v63 = vsel %vm725_vm13, %v1872_v9, %v724_v49  ;;  %v940_v1 = vmul.f32 %v1948_v17, %v939_v15  ;;  %v1988_v3 = vld [vmem:[#allocation2 + $0x18] sm:$0xff] }
 0x164   :  { %v1066_v21 = vsub.f32 %v765_v56, %v973_v35  ;;  %v456_v20 = vpop.xlane.xlu1 %455  ;;  %582 = vst.msk [vmem:[#allocation2 + $0x38] sm:$0xff] %vm27_vm5, %v565_v36  ;;  %v881_v55 = vmul.f32 0.5, %v880_v45  ;;  %v978_v58 = vsub.f32 1.5, %v977_v7  ;;  %v681_v27 = vsel %vm679_vm11, %v680_v54, %v678_v14  ;;  %v2002_v30 = vpop.eup %1211 }
 0x165   :  { %v564_v40 = vmax.f32 %v548_v8, %v456_v20  ;;  %v525_v42 = vpop.xlane.xlu0 %524  ;;  %v930_v48 = vsub.f32 1.5, %v929_v59  ;;  %v729_v51 = vsel %vm727_vm1, %v728_v6, %v726_v63  ;;  %v888_v9 = vand.u32 2147483648, %v1911_v33 }
 0x166   :  { %v1082_v44 = vadd.f32 0.3, %v1066_v21  ;;  %v614_v53 = vmin.f32 %v598_v22, %v525_v42  ;;  %v882_v62 = vsub.f32 1.5, %v881_v55  ;;  %v979_v23 = vmul.f32 %v1906_v5, %v978_v58  ;;  %v2006_v5 = vld [vmem:[#allocation2 + $0x70] sm:$0xff] }
 0x167   :  { %581 = vst.msk [vmem:[#allocation2 + $0x30] sm:$0xff] %vm27_vm5, %v564_v40  ;;  %v931_v60 = vmul.f32 %v1206_v4, %v930_v48  ;;  %v936_v4 = vand.u32 2147483648, %v1900_v39  ;;  %v2000_v32 = vld [vmem:[#allocation3 + $0x50] sm:$0xff]  ;;  %1215 = vrsqrt.f32 %v1988_v3  ;;  %v941_v24 = vmul.f32 0.5, %v940_v1 }
 0x168   :  { %v1098_v12 = vmax.f32 %v1082_v44, 0.0  ;;  %630 = vst.msk [vmem:[#allocation3 + $0x38] sm:$0xff] %vm27_vm5, %v614_v53  ;;  %v883_v56 = vmul.f32 %v1208_v43, %v882_v62  ;;  %v779_v34 = vmul.f32 %v2002_v30, %v1962_v57  ;;  %v2014_v8 = vld [vmem:[#allocation2 + $0x10] sm:$0xff]  ;;  %1217 = vrsqrt.f32 %v2000_v32 }
 0x169   :  { %v932_v0 = vmul.f32 %v931_v60, %v1900_v39  ;;  %v807_v36 = vmul.f32 %v1885_v31, %v806_v46  ;;  %1219 = vrsqrt.f32 %v2006_v5  ;;  %v980_v20 = vmul.f32 %v979_v23, %v1875_v28 }
 0x16a   :  { %1114 = vst.msk [vmem:[%s2380_s6 + $0x40] sm:$0xff] %vm27_vm5, %v1098_v12  ;;  %v884_v29 = vmul.f32 %v883_v56, %v1911_v33  ;;  %v780_v38 = vmul.f32 %v2002_v30, %v779_v34  ;;  %1221 = vrsqrt.f32 %v2014_v8  ;;  %v824_v7 = vand.u32 2147483648, %v1825_v19 }
 0x16b   :  { %v934_v26 = vsel %vm933_vm4, %v1900_v39, %v932_v0  ;;  %v1214_v39 = vpop.eup %1213  ;;  %v2018_v37 = vld [vmem:[#allocation2 + $0x38] sm:$0xff]  ;;  %v942_v44 = vsub.f32 1.5, %v941_v24  ;;  %v822_v47 = vsel %vm821_vm2, %v1825_v19, %v1971_v52  ;;  %v808_v49 = vmul.f32 %v807_v36, %v1846_v11 }
 0x16c   :  { %v1990_v18 = vpop.xlane.xlu1 %514  ;;  %v937_v13 = vsel %vm935_vm3, %v936_v4, %v934_v26  ;;  %v886_v41 = vsel %vm885_vm8, %v1911_v33, %v884_v29  ;;  %v767_v2 = vmul.f32 %v1214_v39, %v1967_v61  ;;  %v2023_v33 = vpop.xlane.xlu2 %516  ;;  %v781_v40 = vmul.f32 0.5, %v780_v38 }
 0x16d   :  { %v1063_v16 = vsub.f32 %v729_v51, %v937_v13  ;;  %v889_v35 = vsel %vm887_vm6, %v888_v9, %v886_v41  ;;  %1223 = vrsqrt.f32 %v2018_v37  ;;  %v2033_v10 = vpop.eup %1215  ;;  %v812_v12 = vand.u32 2147483648, %v1846_v11  ;;  %v2076_v26 = vpop.xlane.xlu0 %465 }
 0x16e   :  { %v1059_v21 = vsub.f32 %v681_v27, %v889_v35  ;;  %v768_v25 = vmul.f32 %v1214_v39, %v767_v2  ;;  %v2029_v31 = vld [vmem:[#allocation2 + $0x30] sm:$0xff]  ;;  %v782_v53 = vsub.f32 1.5, %v781_v40  ;;  %v1218_v54 = vpop.eup %1217  ;;  %v982_v15 = vsel %vm981_vm15, %v1875_v28, %v980_v20 }
 0x16f   :  { %v1079_v43 = vadd.f32 0.3, %v1063_v16  ;;  %1225 = vrsqrt.f32 %v2029_v31  ;;  %v2049_v46 = vpop.eup %1219  ;;  %v984_v58 = vand.u32 2147483648, %v1875_v28  ;;  %v695_v60 = vmul.f32 %v2033_v10, %v1988_v3  ;;  %v2104_v20 = vld [vmem:[#allocation3 + $0x38] sm:$0xff] }
 0x170   :  { %v1075_v59 = vadd.f32 0.3, %v1059_v21  ;;  %v769_v45 = vmul.f32 0.5, %v768_v25  ;;  %v987_v52 = vmul.f32 %v1218_v54, %v2000_v32  ;;  %v2060_v62 = vpop.eup %1221  ;;  %v2064_v14 = vsel %vm823_vm7, %v824_v7, %v822_v47 }
 0x171   :  { %v1095_v22 = vmax.f32 %v1079_v43, 0.0  ;;  %v943_v63 = vmul.f32 %v1948_v17, %v942_v44  ;;  %v948_v28 = vand.u32 2147483648, %v1917_v50  ;;  %v2073_v1 = vsel %vm809_vm9, %v1846_v11, %v808_v49  ;;  %v594_v44 = vld [vmem:[#allocation3 + $0x18] sm:$0xff] }
 0x172   :  { %v1091_v48 = vmax.f32 %v1075_v59, 0.0  ;;  %v770_v55 = vsub.f32 1.5, %v769_v45  ;;  %v985_v4 = vsel %vm983_vm10, %v984_v58, %v982_v15  ;;  %v783_v56 = vmul.f32 %v2002_v30, %v782_v53  ;;  %v553_v53 = vld [vmem:[#allocation2 + $0x58] sm:$0xff] }
 0x173   :  { %1111 = vst.msk [vmem:[%s2380_s6 + $0x28] sm:$0xff] %vm27_vm5, %v1095_v22  ;;  %v2068_v0 = vpop.eup %1223  ;;  %v988_v23 = vmul.f32 %v1218_v54, %v987_v52  ;;  %vm773_vm12 = vcmp.eq.f32.partialorder %v1967_v61, inf  ;;  %v827_v17 = vmul.f32 %v2049_v46, %v2006_v5  ;;  %v776_v51 = vand.u32 2147483648, %v1967_v61  ;;  %v557_v52 = vld [vmem:[#allocation2 + $0x78] sm:$0xff] }
 0x174   :  { %v2031_v42 = vpop.xlane.xlu1 %473  ;;  %1107 = vst.msk [vmem:[%s2380_s6 + $0x8] sm:$0xff] %vm27_vm5, %v1091_v48  ;;  %v771_v6 = vmul.f32 %v1214_v39, %v770_v55  ;;  %v743_v27 = vmul.f32 %v2068_v0, %v2018_v37  ;;  %v696_v13 = vmul.f32 %v2033_v10, %v695_v60  ;;  %v683_v29 = vmul.f32 %v2060_v62, %v2014_v8  ;;  %v2088_v16 = vpop.xlane.xlu2 %534  ;;  %v593_v48 = vld [vmem:[#allocation3 + $0x10] sm:$0xff]  ;;  %v603_v60 = vld [vmem:[#allocation3 + $0x60] sm:$0xff] }
 0x175   :  { %v989_v30 = vmul.f32 0.5, %v988_v23  ;;  %v1226_v9 = vpop.eup %1225  ;;  %v2091_v39 = vmul.f32 %v943_v63, %v1917_v50  ;;  %vm785_vm14 = vcmp.eq.f32.partialorder %v1962_v57, inf  ;;  %v784_v41 = vmul.f32 %v783_v56, %v1962_v57  ;;  %v604_v23 = vld [vmem:[#allocation3 + $0x68] sm:$0xff] }
 0x176   :  { %v772_v19 = vmul.f32 %v771_v6, %v1967_v61  ;;  %vm787_vm11 = vcmp.eq.f32.partialorder %v1962_v57, 0.0  ;;  %vm945_vm13 = vcmp.eq.f32.partialorder %v1917_v50, inf  ;;  %v828_v36 = vmul.f32 %v2049_v46, %v827_v17 }
 0x177   :  { %v990_v43 = vsub.f32 1.5, %v989_v30  ;;  %v744_v21 = vmul.f32 %v2068_v0, %v743_v27  ;;  %v731_v38 = vmul.f32 %v1226_v9, %v2029_v31  ;;  %v697_v22 = vmul.f32 0.5, %v696_v13 }
 0x178   :  { %v774_v24 = vsel %vm773_vm12, %v1967_v61, %v772_v19  ;;  %v788_v61 = vand.u32 2147483648, %v1962_v57  ;;  %v684_v25 = vmul.f32 %v2060_v62, %v683_v29  ;;  %vm993_vm4 = vcmp.eq.f32.partialorder %v2000_v32, inf  ;;  %v537_v19 = vpop.xlane.xlu0 %536 }
 0x179   :  { %v777_v34 = vsel %vm775_vm0, %v776_v51, %v774_v24  ;;  %v991_v7 = vmul.f32 %v1218_v54, %v990_v43  ;;  %vm995_vm2 = vcmp.eq.f32.partialorder %v2000_v32, 0.0  ;;  %v732_v40 = vmul.f32 %v1226_v9, %v731_v38  ;;  %v606_v24 = vld [vmem:[#allocation3 + $0x78] sm:$0xff] }
 0x17a   :  { %v1067_v2 = vsub.f32 %v777_v34, %v985_v4  ;;  %v786_v45 = vsel %vm785_vm14, %v1962_v57, %v784_v41  ;;  %v996_v49 = vand.u32 2147483648, %v2000_v32  ;;  %1227 = vrsqrt.f32 %v2104_v20 }
 0x17b   :  { %v992_v47 = vmul.f32 %v991_v7, %v2000_v32  ;;  %vm811_vm1 = vcmp.eq.f32.partialorder %v1846_v11, 0.0  ;;  %vm947_vm3 = vcmp.eq.f32.partialorder %v1917_v50, 0.0  ;;  %v2118_v15 = vmul.f32 0.5, %v828_v36  ;;  %v602_v36 = vld [vmem:[#allocation3 + $0x58] sm:$0xff] }
 0x17c   :  { %v2098_v35 = vpop.xlane.xlu1 %532  ;;  %v1083_v59 = vadd.f32 0.3, %v1067_v2  ;;  %v745_v55 = vmul.f32 0.5, %v744_v21  ;;  %v733_v58 = vmul.f32 0.5, %v732_v40  ;;  %v698_v63 = vsub.f32 1.5, %v697_v22  ;;  %v541_v41 = vpop.xlane.xlu2 %540 }
 0x17d   :  { %v685_v6 = vmul.f32 0.5, %v684_v25  ;;  %v994_v4 = vsel %vm993_vm4, %v2000_v32, %v992_v47  ;;  %v610_v56 = vmin.f32 %v594_v44, %v2023_v33  ;;  %v789_v17 = vsel %vm787_vm11, %v788_v61, %v786_v45 }
 0x17e   :  { %v1099_v54 = vmax.f32 %v1083_v59, 0.0  ;;  %v997_v27 = vsel %vm995_vm2, %v996_v49, %v994_v4  ;;  %v734_v51 = vsub.f32 1.5, %v733_v58  ;;  %v609_v13 = vmin.f32 %v593_v48, %v1990_v18 }
 0x17f   :  { %v1068_v29 = vsub.f32 %v789_v17, %v997_v27  ;;  %626 = vst.msk [vmem:[#allocation3 + $0x18] sm:$0xff] %vm27_vm5, %v610_v56  ;;  %v569_v33 = vmax.f32 %v553_v53, %v2076_v26  ;;  %v619_v30 = vmin.f32 %v603_v60, %v2088_v16  ;;  %v573_v57 = vmax.f32 %v557_v52, %v2031_v42  ;;  %v605_v42 = vld [vmem:[#allocation3 + $0x70] sm:$0xff] }
 0x180   :  { %1115 = vst.msk [vmem:[%s2380_s6 + $0x48] sm:$0xff] %vm27_vm5, %v1099_v54  ;;  %v830_v34 = vsub.f32 1.5, %v2118_v15  ;;  %v746_v43 = vsub.f32 1.5, %v745_v55  ;;  %v735_v2 = vmul.f32 %v1226_v9, %v734_v51  ;;  %v620_v32 = vmin.f32 %v604_v23, %v537_v19  ;;  %v1228_v18 = vpop.eup %1227 }
 0x181   :  { %625 = vst.msk [vmem:[#allocation3 + $0x10] sm:$0xff] %vm27_vm5, %v609_v13  ;;  %v946_v26 = vsel %vm945_vm13, %v1917_v50, %v2091_v39  ;;  %v686_v21 = vsub.f32 1.5, %v685_v6  ;;  %v1084_v16 = vadd.f32 0.3, %v1068_v29  ;;  %vm737_vm8 = vcmp.eq.f32.partialorder %v2029_v31, inf }
 0x182   :  { %586 = vst.msk [vmem:[#allocation2 + $0x58] sm:$0xff] %vm27_vm5, %v569_v33  ;;  %v736_v9 = vmul.f32 %v735_v2, %v2029_v31  ;;  %vm739_vm7 = vcmp.eq.f32.partialorder %v2029_v31, 0.0  ;;  %v951_v61 = vmul.f32 %v1228_v18, %v2104_v20  ;;  %v622_v22 = vmin.f32 %v606_v24, %v541_v41 }
 0x183   :  { %635 = vst.msk [vmem:[#allocation3 + $0x60] sm:$0xff] %vm27_vm5, %v619_v30  ;;  %v699_v25 = vmul.f32 %v2033_v10, %v698_v63  ;;  %v1100_v39 = vmax.f32 %v1084_v16, 0.0  ;;  %v740_v7 = vand.u32 2147483648, %v2029_v31  ;;  %v618_v59 = vmin.f32 %v602_v36, %v2098_v35 }
 0x184   :  { %v539_v38 = vpop.xlane.xlu1 %538  ;;  %590 = vst.msk [vmem:[#allocation2 + $0x78] sm:$0xff] %vm27_vm5, %v573_v57  ;;  %v747_v40 = vmul.f32 %v2068_v0, %v746_v43  ;;  %v738_v44 = vsel %vm737_vm8, %v2029_v31, %v736_v9  ;;  %v952_v45 = vmul.f32 %v1228_v18, %v951_v61  ;;  %v2161_v10 = vsel %vm811_vm1, %v812_v12, %v2073_v1 }
 0x185   :  { %636 = vst.msk [vmem:[#allocation3 + $0x68] sm:$0xff] %vm27_vm5, %v620_v32  ;;  %v621_v47 = vmin.f32 %v605_v42, %v539_v38  ;;  %v949_v35 = vsel %vm947_vm3, %v948_v28, %v946_v26  ;;  %v687_v0 = vmul.f32 %v2060_v62, %v686_v21  ;;  %v741_v49 = vsel %vm739_vm7, %v740_v7, %v738_v44 }
 0x186   :  { %1116 = vst.msk [vmem:[%s2380_s6 + $0x50] sm:$0xff] %vm27_vm5, %v1100_v39  ;;  %vm701_vm6 = vcmp.eq.f32.partialorder %v1988_v3, inf  ;;  %vm703_vm9 = vcmp.eq.f32.partialorder %v1988_v3, 0.0  ;;  %v1064_v11 = vsub.f32 %v741_v49, %v949_v35  ;;  %v953_v12 = vmul.f32 0.5, %v952_v45  ;;  %v2176_v1 = vld [vmem:[#allocation3 + $0x18] sm:$0xff] }
 0x187   :  { %638 = vst.msk [vmem:[#allocation3 + $0x78] sm:$0xff] %vm27_vm5, %v622_v22  ;;  %v831_v50 = vmul.f32 %v2049_v46, %v830_v34  ;;  %v700_v62 = vmul.f32 %v699_v25, %v1988_v3  ;;  %v704_v28 = vand.u32 2147483648, %v1988_v3  ;;  %1229 = vrsqrt.f32 %v2176_v1 }
 0x188   :  { %v2183_v31 = vld [vmem:[#allocation3 + $0x10] sm:$0xff]  ;;  %634 = vst.msk [vmem:[#allocation3 + $0x58] sm:$0xff] %vm27_vm5, %v618_v59  ;;  %v748_v48 = vmul.f32 %v747_v40, %v2018_v37  ;;  %v1080_v53 = vadd.f32 0.3, %v1064_v11  ;;  %v954_v54 = vsub.f32 1.5, %v953_v12  ;;  %v688_v46 = vmul.f32 %v687_v0, %v2014_v8 }
 0x189   :  { %1231 = vrsqrt.f32 %v2183_v31  ;;  %v2188_v15 = vld [vmem:[#allocation2 + $0x58] sm:$0xff]  ;;  %637 = vst.msk [vmem:[#allocation3 + $0x70] sm:$0xff] %vm27_vm5, %v621_v47  ;;  %vm689_vm15 = vcmp.eq.f32.partialorder %v2014_v8, inf  ;;  %vm691_vm10 = vcmp.eq.f32.partialorder %v2014_v8, 0.0  ;;  %v692_v58 = vand.u32 2147483648, %v2014_v8 }
 0x18a   :  { %1233 = vrsqrt.f32 %v2188_v15  ;;  %v2195_v55 = vld [vmem:[#allocation3 + $0x60] sm:$0xff]  ;;  %vm749_vm12 = vcmp.eq.f32.partialorder %v2018_v37, inf  ;;  %v1096_v60 = vmax.f32 %v1080_v53, 0.0  ;;  %v955_v52 = vmul.f32 %v1228_v18, %v954_v54 }
 0x18b   :  { %v2199_v63 = vld [vmem:[#allocation2 + $0x78] sm:$0xff]  ;;  %v2202_v6 = vmul.f32 %v831_v50, %v2006_v5  ;;  %vm751_vm14 = vcmp.eq.f32.partialorder %v2018_v37, 0.0  ;;  %v752_v4 = vand.u32 2147483648, %v2018_v37  ;;  %1235 = vrsqrt.f32 %v2195_v55 }
 0x18c   :  { %v2207_v56 = vld [vmem:[#allocation3 + $0x68] sm:$0xff]  ;;  %v702_v23 = vsel %vm701_vm6, %v1988_v3, %v700_v62  ;;  %v750_v19 = vsel %vm749_vm12, %v2018_v37, %v748_v48  ;;  %1112 = vst.msk [vmem:[%s2380_s6 + $0x30] sm:$0xff] %vm27_vm5, %v1096_v60  ;;  %v956_v17 = vmul.f32 %v955_v52, %v2104_v20  ;;  %1237 = vrsqrt.f32 %v2199_v63 }
 0x18d   :  { %v1230_v27 = vpop.eup %1229  ;;  %v690_v51 = vsel %vm689_vm15, %v2014_v8, %v688_v46  ;;  %vm957_vm0 = vcmp.eq.f32.partialorder %v2104_v20, inf  ;;  %v960_v13 = vand.u32 2147483648, %v2104_v20  ;;  %1239 = vrsqrt.f32 %v2207_v56 }
 0x18e   :  { %v2225_v29 = vld [vmem:[#allocation3 + $0x78] sm:$0xff]  ;;  %v958_v30 = vsel %vm957_vm0, %v2104_v20, %v956_v17  ;;  %vm959_vm11 = vcmp.eq.f32.partialorder %v2104_v20, 0.0  ;;  %v903_v57 = vmul.f32 %v1230_v27, %v2176_v1  ;;  %v2235_v34 = vsel %vm703_vm9, %v704_v28, %v702_v23 }
 0x18f   :  { %v1232_v33 = vpop.eup %1231  ;;  %1241 = vrsqrt.f32 %v2225_v29  ;;  %v2231_v24 = vld [vmem:[#allocation3 + $0x58] sm:$0xff]  ;;  %v753_v43 = vsel %vm751_vm14, %v752_v4, %v750_v19  ;;  %v961_v2 = vsel %vm959_vm11, %v960_v13, %v958_v30  ;;  %v2242_v20 = vsel %vm691_vm10, %v692_v58, %v690_v51 }
 0x190   :  { %v1234_v41 = vpop.eup %1233  ;;  %v891_v32 = vmul.f32 %v1232_v33, %v2183_v31  ;;  %v1065_v36 = vsub.f32 %v753_v43, %v961_v2  ;;  %v904_v18 = vmul.f32 %v1230_v27, %v903_v57  ;;  %vm909_vm13 = vcmp.eq.f32.partialorder %v2176_v1, inf  ;;  %v2261_v12 = vld [vmem:[#allocation3 + $0x70] sm:$0xff] }
 0x191   :  { %v791_v26 = vmul.f32 %v1234_v41, %v2188_v15  ;;  %v1236_v21 = vpop.eup %1235  ;;  %v912_v3 = vand.u32 2147483648, %v2176_v1  ;;  %1243 = vrsqrt.f32 %v2231_v24  ;;  %vm911_vm4 = vcmp.eq.f32.partialorder %v2176_v1, 0.0 }
 0x192   :  { %v892_v16 = vmul.f32 %v1232_v33, %v891_v32  ;;  %v1238_v37 = vpop.eup %1237  ;;  %v1081_v42 = vadd.f32 0.3, %v1065_v36  ;;  %v905_v38 = vmul.f32 0.5, %v904_v18  ;;  %vm897_vm2 = vcmp.eq.f32.partialorder %v2183_v31, inf }
 0x193   :  { %v792_v8 = vmul.f32 %v1234_v41, %v791_v26  ;;  %v1011_v9 = vmul.f32 %v1236_v21, %v2195_v55  ;;  %v1240_v61 = vpop.eup %1239  ;;  %vm899_vm1 = vcmp.eq.f32.partialorder %v2183_v31, 0.0  ;;  %v900_v25 = vand.u32 2147483648, %v2183_v31 }
 0x194   :  { %v893_v22 = vmul.f32 0.5, %v892_v16  ;;  %v1020_v39 = vand.u32 2147483648, %v2195_v55  ;;  %v839_v7 = vmul.f32 %v1238_v37, %v2199_v63  ;;  %v1097_v40 = vmax.f32 %v1081_v42, 0.0 }
 0x195   :  { %v2255_v59 = vpop.eup %1241  ;;  %v906_v44 = vsub.f32 1.5, %v905_v38  ;;  %v793_v45 = vmul.f32 0.5, %v792_v8  ;;  %v1012_v47 = vmul.f32 %v1236_v21, %v1011_v9  ;;  %vm1017_vm3 = vcmp.eq.f32.partialorder %v2195_v55, inf }
 0x196   :  { %v894_v35 = vsub.f32 1.5, %v893_v22  ;;  %v840_v0 = vmul.f32 %v1238_v37, %v839_v7  ;;  %v1023_v49 = vmul.f32 %v1240_v61, %v2207_v56  ;;  %v1047_v11 = vmul.f32 %v2255_v59, %v2225_v29  ;;  %1113 = vst.msk [vmem:[%s2380_s6 + $0x38] sm:$0xff] %vm27_vm5, %v1097_v40 }
 0x197   :  { %v907_v50 = vmul.f32 %v1230_v27, %v906_v44  ;;  %v794_v62 = vsub.f32 1.5, %v793_v45  ;;  %v1013_v28 = vmul.f32 0.5, %v1012_v47  ;;  %vm1019_vm8 = vcmp.eq.f32.partialorder %v2195_v55, 0.0  ;;  %v1244_v53 = vpop.eup %1243 }
 0x198   :  { %v848_v48 = vand.u32 2147483648, %v2199_v63  ;;  %v895_v54 = vmul.f32 %v1232_v33, %v894_v35  ;;  %v841_v46 = vmul.f32 0.5, %v840_v0  ;;  %vm845_vm7 = vcmp.eq.f32.partialorder %v2199_v63, inf }
 0x199   :  { %v1024_v58 = vmul.f32 %v1240_v61, %v1023_v49  ;;  %v1048_v60 = vmul.f32 %v2255_v59, %v1047_v11  ;;  %v908_v52 = vmul.f32 %v907_v50, %v2176_v1  ;;  %v1014_v4 = vsub.f32 1.5, %v1013_v28 }
 0x19a   :  { %vm1029_vm6 = vcmp.eq.f32.partialorder %v2207_v56, inf  ;;  %v999_v23 = vmul.f32 %v1244_v53, %v2231_v24  ;;  %1245 = vrsqrt.f32 %v2261_v12  ;;  %v896_v19 = vmul.f32 %v895_v54, %v2183_v31 }
 0x19b   :  { %v795_v17 = vmul.f32 %v1234_v41, %v794_v62  ;;  %v842_v27 = vsub.f32 1.5, %v841_v46  ;;  %v1025_v51 = vmul.f32 0.5, %v1024_v58  ;;  %vm1031_vm9 = vcmp.eq.f32.partialorder %v2207_v56, 0.0 }
 0x19c   :  { %v910_v13 = vsel %vm909_vm13, %v2176_v1, %v908_v52  ;;  %v1015_v33 = vmul.f32 %v1236_v21, %v1014_v4  ;;  %v1049_v30 = vmul.f32 0.5, %v1048_v60  ;;  %v1000_v57 = vmul.f32 %v1244_v53, %v999_v23 }
 0x19d   :  { %v913_v43 = vsel %vm911_vm4, %v912_v3, %v910_v13  ;;  %v898_v2 = vsel %vm897_vm2, %v2183_v31, %v896_v19  ;;  %vm797_vm15 = vcmp.eq.f32.partialorder %v2188_v15, inf  ;;  %v843_v41 = vmul.f32 %v1238_v37, %v842_v27 }
 0x19e   :  { %vm847_vm10 = vcmp.eq.f32.partialorder %v2199_v63, 0.0  ;;  %v1026_v32 = vsub.f32 1.5, %v1025_v51  ;;  %v1061_v36 = vsub.f32 %v2235_v34, %v913_v43  ;;  %v901_v18 = vsel %vm899_vm1, %v900_v25, %v898_v2 }
 0x19f   :  { %v1016_v26 = vmul.f32 %v1015_v33, %v2195_v55  ;;  %v1032_v1 = vand.u32 2147483648, %v2207_v56  ;;  %v1060_v21 = vsub.f32 %v2242_v20, %v901_v18  ;;  %v844_v3 = vmul.f32 %v843_v41, %v2199_v63 }
 0x1a0   :  { %v1027_v16 = vmul.f32 %v1240_v61, %v1026_v32  ;;  %vm1053_vm12 = vcmp.eq.f32.partialorder %v2225_v29, inf  ;;  %v1246_v37 = vpop.eup %1245  ;;  %v1077_v42 = vadd.f32 0.3, %v1061_v36  ;;  %v1050_v38 = vsub.f32 1.5, %v1049_v30 }
 0x1a1   :  { %v1018_v34 = vsel %vm1017_vm3, %v2195_v55, %v1016_v26  ;;  %v1001_v31 = vmul.f32 0.5, %v1000_v57  ;;  %v1076_v8 = vadd.f32 0.3, %v1060_v21  ;;  %v796_v9 = vmul.f32 %v795_v17, %v2188_v15 }
 0x1a2   :  { %vm799_vm14 = vcmp.eq.f32.partialorder %v2188_v15, 0.0  ;;  %v1021_v20 = vsel %vm1019_vm8, %v1020_v39, %v1018_v34  ;;  %v1028_v61 = vmul.f32 %v1027_v16, %v2207_v56  ;;  %v1093_v22 = vmax.f32 %v1077_v42, 0.0 }
 0x1a3   :  { %v1070_v25 = vsub.f32 %v2161_v10, %v1021_v20  ;;  %v846_v7 = vsel %vm845_vm7, %v2199_v63, %v844_v3  ;;  %v1051_v40 = vmul.f32 %v2255_v59, %v1050_v38  ;;  %v1092_v44 = vmax.f32 %v1076_v8, 0.0 }
 0x1a4   :  { %v1030_v45 = vsel %vm1029_vm6, %v2207_v56, %v1028_v61  ;;  %v1002_v47 = vsub.f32 1.5, %v1001_v31  ;;  %v1035_v55 = vmul.f32 %v1246_v37, %v2261_v12  ;;  %1109 = vst.msk [vmem:[%s2380_s6 + $0x18] sm:$0xff] %vm27_vm5, %v1093_v22  ;;  %vm1055_vm0 = vcmp.eq.f32.partialorder %v2225_v29, 0.0 }
 0x1a5   :  { %v1086_v10 = vadd.f32 0.3, %v1070_v25  ;;  %v1033_v39 = vsel %vm1031_vm9, %v1032_v1, %v1030_v45  ;;  %v1052_v35 = vmul.f32 %v1051_v40, %v2225_v29  ;;  %1108 = vst.msk [vmem:[%s2380_s6 + $0x10] sm:$0xff] %vm27_vm5, %v1092_v44  ;;  %v1056_v0 = vand.u32 2147483648, %v2225_v29 }
 0x1a6   :  { %v1071_v59 = vsub.f32 %v2064_v14, %v1033_v39  ;;  %v1003_v49 = vmul.f32 %v1244_v53, %v1002_v47  ;;  %v1036_v11 = vmul.f32 %v1246_v37, %v1035_v55  ;;  %v798_v56 = vsel %vm797_vm15, %v2188_v15, %v796_v9 }
 0x1a7   :  { %v1102_v50 = vmax.f32 %v1086_v10, 0.0  ;;  %v849_v62 = vsel %vm847_vm10, %v848_v48, %v846_v7  ;;  %v1054_v28 = vsel %vm1053_vm12, %v2225_v29, %v1052_v35  ;;  %v800_v58 = vand.u32 2147483648, %v2188_v15 }
 0x1a8   :  { %v1087_v54 = vadd.f32 0.3, %v1071_v59  ;;  %v1057_v14 = vsel %vm1055_vm0, %v1056_v0, %v1054_v28  ;;  %v1004_v46 = vmul.f32 %v1003_v49, %v2231_v24  ;;  %v1037_v53 = vmul.f32 0.5, %v1036_v11 }
 0x1a9   :  { %1118 = vst.msk [vmem:[%s2380_s6 + $0x60] sm:$0xff] %vm27_vm5, %v1102_v50  ;;  %v1073_v60 = vsub.f32 %v849_v62, %v1057_v14  ;;  %vm1005_vm11 = vcmp.eq.f32.partialorder %v2231_v24, inf  ;;  %v1008_v63 = vand.u32 2147483648, %v2231_v24  ;;  %vm1007_vm13 = vcmp.eq.f32.partialorder %v2231_v24, 0.0 }
 0x1aa   :  { %v1103_v48 = vmax.f32 %v1087_v54, 0.0  ;;  %v1006_v29 = vsel %vm1005_vm11, %v2231_v24, %v1004_v46  ;;  %v1038_v52 = vsub.f32 1.5, %v1037_v53  ;;  %v801_v4 = vsel %vm799_vm14, %v800_v58, %v798_v56 }
 0x1ab   :  { %v1089_v23 = vadd.f32 0.3, %v1073_v60  ;;  %v1009_v19 = vsel %vm1007_vm13, %v1008_v63, %v1006_v29  ;;  %vm833_vm4 = vcmp.eq.f32.partialorder %v2006_v5, inf  ;;  %v836_v15 = vand.u32 2147483648, %v2006_v5 }
 0x1ac   :  { %1119 = vst.msk [vmem:[%s2380_s6 + $0x68] sm:$0xff] %vm27_vm5, %v1103_v48  ;;  %v1069_v17 = vsub.f32 %v801_v4, %v1009_v19  ;;  %v1039_v27 = vmul.f32 %v1246_v37, %v1038_v52  ;;  %v834_v13 = vsel %vm833_vm4, %v2006_v5, %v2202_v6  ;;  %vm1041_vm2 = vcmp.eq.f32.partialorder %v2261_v12, inf }
 0x1ad   :  { %v1105_v51 = vmax.f32 %v1089_v23, 0.0  ;;  %v1044_v30 = vand.u32 2147483648, %v2261_v12  ;;  %vm835_vm1 = vcmp.eq.f32.partialorder %v2006_v5, 0.0  ;;  %vm1043_vm3 = vcmp.eq.f32.partialorder %v2261_v12, 0.0 }
 0x1ae   :  { %v1085_v24 = vadd.f32 0.3, %v1069_v17  ;;  %v1040_v33 = vmul.f32 %v1039_v27, %v2261_v12  ;;  %v837_v6 = vsel %vm835_vm1, %v836_v15, %v834_v13 }
 0x1af   :  { %1121 = vst.msk [vmem:[%s2380_s6 + $0x78] sm:$0xff] %vm27_vm5, %v1105_v51 }
 0x1b0   :  { %v1101_v57 = vmax.f32 %v1085_v24, 0.0  ;;  %v1042_v43 = vsel %vm1041_vm2, %v2261_v12, %v1040_v33 }
 0x1b1   :  { %v1045_v2 = vsel %vm1043_vm3, %v1044_v30, %v1042_v43 }
 0x1b2   :  { %1117 = vst.msk [vmem:[%s2380_s6 + $0x58] sm:$0xff] %vm27_vm5, %v1101_v57  ;;  %v1072_v41 = vsub.f32 %v837_v6, %v1045_v2 }
 0x1b4   :  { %v1088_v32 = vadd.f32 0.3, %v1072_v41 }
 0x1b6   :  { %v1104_v36 = vmax.f32 %v1088_v32, 0.0 }
 0x1b8   :  { %1120 = vst.msk [vmem:[%s2380_s6 + $0x70] sm:$0xff] %vm27_vm5, %v1104_v36 }

</bundles_post_ra>
